<compile_context>
chip_gen: v7x
topology: tpu7x:2x2x1
jax: 0.10.0
libtpu: 0.0.40
codegen_flags: <defaults>
</compile_context>

<pallas_src>
import math
from functools import partial

import jax
import jax.numpy as jnp
from jax import lax
from jax.experimental import pallas as pl
from jax.experimental.pallas import tpu as pltpu


# ----------------------------------------------------------------------------
# TPU generation awareness (tile ceilings + VMEM limit)
# ----------------------------------------------------------------------------
def _tpu_config():
    cap = 64 << 20
    kind = ""
    try:
        kind = jax.devices()[0].device_kind.lower()
    except Exception:
        pass
    try:
        cap = int(getattr(pltpu.get_tpu_info(), "vmem_capacity_bytes", cap))
    except Exception:
        pass
    cap = max(cap, 32 << 20)
    newer = any(t in kind for t in ("v6", "v7"))
    max_mn = 1024 if newer else 512          # v5e stays at 512 (already at roofline)
    return cap, max_mn


_VMEM_CAP, _MAX_MN = _tpu_config()


def _round_up(x, m):
    return ((x + m - 1) // m) * m


def _pick_tile(dim, gran, max_t):
    """Largest tile <= max_t (multiple of gran) dividing round_up(dim, gran)."""
    dim_r = _round_up(dim, gran)
    if dim_r <= max_t:
        return dim_r
    t = (max_t // gran) * gran
    while t >= max(gran, 128):
        if dim_r % t == 0:
            return t
        t -= gran
    return max_t


def _vmem_limit(est):
    lim = max(est + (16 << 20), 48 << 20)
    lim = min(lim, _VMEM_CAP - (8 << 20))
    lim = max(lim, est + (2 << 20))
    return int(lim)


# ----------------------------------------------------------------------------
# Pallas kernels
# ----------------------------------------------------------------------------
def _mm_kernel_single(relu, sigmoid, res_mode):
    """out = epilogue(A @ W + shift)    (single K block -> no accumulator)."""
    has_res = res_mode is not None

    def kernel(*refs):
        if has_res:
            a_ref, w_ref, s_ref, r_ref, o_ref = refs
        else:
            a_ref, w_ref, s_ref, o_ref = refs
            r_ref = None
        y = jnp.dot(a_ref[...], w_ref[...], preferred_element_type=jnp.float32)
        y = y + s_ref[...]
        if res_mode == "pre_act":
            y = y + r_ref[...].astype(jnp.float32)
        if relu:
            y = jnp.maximum(y, 0.0)
        if sigmoid:
            y = 1.0 / (1.0 + jnp.exp(-y))
        if res_mode == "post_act":
            y = y + r_ref[...].astype(jnp.float32)
        o_ref[...] = y.astype(o_ref.dtype)

    return kernel


def _mm_kernel_kstream(relu, sigmoid, res_mode):
    """K-streamed matmul with f32 VMEM accumulator (reduction axis last)."""
    has_res = res_mode is not None

    def kernel(*refs):
        if has_res:
            a_ref, w_ref, s_ref, r_ref, o_ref, acc_ref = refs
        else:
            a_ref, w_ref, s_ref, o_ref, acc_ref = refs
            r_ref = None

        @pl.when(pl.program_id(2) == 0)
        def _init():
            acc_ref[...] = jnp.zeros_like(acc_ref)

        acc_ref[...] += jnp.dot(a_ref[...], w_ref[...],
                                preferred_element_type=jnp.float32)

        @pl.when(pl.program_id(2) == pl.num_programs(2) - 1)
        def _fin():
            y = acc_ref[...] + s_ref[...]
            if res_mode == "pre_act":
                y = y + r_ref[...].astype(jnp.float32)
            if relu:
                y = jnp.maximum(y, 0.0)
            if sigmoid:
                y = 1.0 / (1.0 + jnp.exp(-y))
            if res_mode == "post_act":
                y = y + r_ref[...].astype(jnp.float32)
            o_ref[...] = y.astype(o_ref.dtype)

    return kernel


def _taps_kernel(offs, relu, sigmoid, rows):
    """Stride-1 conv without im2col: the whole row-flattened padded image is
    VMEM resident and the KH*KW taps are static shifted slices of it."""

    def kernel(x_ref, w_ref, s_ref, o_ref, acc_ref):
        @pl.when(pl.program_id(2) == 0)
        def _init():
            acc_ref[...] = jnp.zeros_like(acc_ref)

        for t, off in enumerate(offs):
            a = x_ref[0, off:off + rows, :]            # (rows, tc) bf16 view
            acc_ref[...] += jnp.dot(a, w_ref[t],
                                    preferred_element_type=jnp.float32)

        @pl.when(pl.program_id(2) == pl.num_programs(2) - 1)
        def _fin():
            y = acc_ref[...] + s_ref[...]
            if relu:
                y = jnp.maximum(y, 0.0)
            if sigmoid:
                y = 1.0 / (1.0 + jnp.exp(-y))
            o_ref[0] = y.astype(o_ref.dtype)

    return kernel


# ----------------------------------------------------------------------------
# Fused matmul wrapper (1x1 convolutions and im2col fallback)
# ----------------------------------------------------------------------------
def _fused_matmul(A, Wm, shift, res, *, relu, sigmoid, res_mode, out_dtype):
    M, K = A.shape
    _, N = Wm.shape
    oisz = jnp.dtype(out_dtype).itemsize

    tm = _pick_tile(M, 16, _MAX_MN)
    tn = N if N < 128 else _pick_tile(N, 128, _MAX_MN)
    if K <= 2048:
        Kp = K if (K % 128 == 0 or K < 128) else _round_up(K, 128)
        tk = Kp
    else:
        tk = _pick_tile(K, 128, 512)
        Kp = _round_up(K, tk)
    Mp, Np = _round_up(M, tm), _round_up(N, tn)

    A_p = A if (Mp == M and Kp == K) else jnp.pad(A, ((0, Mp - M), (0, Kp - K)))
    W_p = Wm if (Kp == K and Np == N) else jnp.pad(Wm, ((0, Kp - K), (0, Np - N)))
    sh = shift.reshape(1, N).astype(jnp.float32)
    sh_p = sh if Np == N else jnp.pad(sh, ((0, 0), (0, Np - N)))

    gm, gn, gk = Mp // tm, Np // tn, Kp // tk
    has_res = res_mode is not None
    if has_res:
        R_p = res if (Mp == M and Np == N) else jnp.pad(res, ((0, Mp - M), (0, Np - N)))

    est = 2 * (tm * tk * 2 + tk * tn * 2 + tm * tn * oisz + tn * 4)
    if has_res:
        est += 2 * tm * tn * res.dtype.itemsize
    if gk > 1:
        est += tm * tn * 4

    if gk == 1:
        a_bytes, w_bytes = Mp * Kp * 2, Kp * Np * 2
        # order the 2-D grid so the cheaper operand is the one re-streamed
        if gn * a_bytes + w_bytes < a_bytes + gm * w_bytes:
            grid = (gn, gm)
            amap = lambda j, i: (i, 0); wmap = lambda j, i: (0, j)
            smap = lambda j, i: (0, j); omap = lambda j, i: (i, j)
        else:
            grid = (gm, gn)
            amap = lambda i, j: (i, 0); wmap = lambda i, j: (0, j)
            smap = lambda i, j: (0, j); omap = lambda i, j: (i, j)
        kernel = _mm_kernel_single(relu, sigmoid, res_mode)
        scratch = ()
        dims = ("parallel", "parallel")
    else:
        if gn > gm:
            grid = (gn, gm, gk)
            amap = lambda j, i, k: (i, k); wmap = lambda j, i, k: (k, j)
            smap = lambda j, i, k: (0, j); omap = lambda j, i, k: (i, j)
        else:
            grid = (gm, gn, gk)
            amap = lambda i, j, k: (i, k); wmap = lambda i, j, k: (k, j)
            smap = lambda i, j, k: (0, j); omap = lambda i, j, k: (i, j)
        kernel = _mm_kernel_kstream(relu, sigmoid, res_mode)
        scratch = (pltpu.VMEM((tm, tn), jnp.float32),)
        dims = ("parallel", "parallel", "arbitrary")

    operands = [A_p, W_p, sh_p]
    in_specs = [pl.BlockSpec((tm, tk), amap),
                pl.BlockSpec((tk, tn), wmap),
                pl.BlockSpec((1, tn), smap)]
    bytes_accessed = Mp * Kp * 2 + Kp * Np * 2 + Mp * Np * oisz
    if has_res:
        operands.append(R_p)
        in_specs.append(pl.BlockSpec((tm, tn), omap))
        bytes_accessed += Mp * Np * R_p.dtype.itemsize

    out = pl.pallas_call(
        kernel,
        out_shape=jax.ShapeDtypeStruct((Mp, Np), out_dtype),
        grid_spec=pltpu.PrefetchScalarGridSpec(
            num_scalar_prefetch=0,
            grid=grid,
            in_specs=in_specs,
            out_specs=pl.BlockSpec((tm, tn), omap),
            scratch_shapes=scratch),
        compiler_params=pltpu.CompilerParams(
            dimension_semantics=dims,
            vmem_limit_bytes=_vmem_limit(est)),
        cost_estimate=pl.CostEstimate(
            flops=2 * Mp * Np * Kp,
            transcendentals=Mp * Np if sigmoid else 0,
            bytes_accessed=bytes_accessed),
    )(*operands)
    if Mp != M or Np != N:
        out = out[:M, :N]
    return out


# ----------------------------------------------------------------------------
# Convolution wrapper
# ----------------------------------------------------------------------------
@partial(jax.jit, static_argnames=("stride", "padding", "dilation", "relu",
                                   "sigmoid", "res_mode", "out_dtype"))
def _conv2d_nhwc(x, w_torch, bias, bn, residual, *, stride, padding, dilation,
                 relu, sigmoid, res_mode, out_dtype):
    Cout, Cin, KH, KW = w_torch.shape
    (pt, pb), (pl_, pr_) = padding
    Nb, H, W_, _ = x.shape

    # Fold BatchNorm (inference) into a per-channel scale (into the weights)
    # and an additive shift (kernel epilogue).
    if bn is not None:
        gamma, beta, mean, var = bn
        scale = gamma * lax.rsqrt(var + 1e-5)
        shift = beta - mean * scale
        if bias is not None:
            shift = shift + bias * scale
    else:
        scale = None
        shift = bias if bias is not None else jnp.zeros((Cout,), jnp.float32)
    shift = shift.astype(jnp.float32)

    # ---------------- 1x1 fast path (pure matmul, no im2col) -----------------
    if KH == 1 and KW == 1 and dilation == 1:
        Wm = jnp.transpose(w_torch, (2, 3, 1, 0)).reshape(Cin, Cout)
        if scale is not None:
            Wm = Wm * scale[None, :]
        Wm = Wm.astype(jnp.bfloat16)
        xe = x
        if pt or pb or pl_ or pr_:
            xe = jnp.pad(xe, ((0, 0), (pt, pb), (pl_, pr_), (0, 0)))
        if stride > 1:
            xe = xe[:, ::stride, ::stride, :]
        _, OH, OW, _ = xe.shape
        A = xe.reshape(Nb * OH * OW, Cin).astype(jnp.bfloat16)
        res2d = residual.reshape(Nb * OH * OW, Cout) if residual is not None else None
        out = _fused_matmul(A, Wm, shift, res2d, relu=relu, sigmoid=sigmoid,
                            res_mode=res_mode, out_dtype=out_dtype)
        return out.reshape(Nb, OH, OW, Cout)

    Hp, Wp = H + pt + pb, W_ + pl_ + pr_
    OH = (Hp - dilation * (KH - 1) - 1) // stride + 1
    OW = (Wp - dilation * (KW - 1) - 1) // stride + 1

    # ------------- stride-1 tap-extraction path (no im2col in HBM) -----------
    if stride == 1 and residual is None and res_mode is None:
        tc = Cin if Cin <= 512 else 512
        tn = Cout if Cout <= 512 else 512
        if Cin % tc == 0 and Cout % tn == 0:
            Mr = OH * Wp                               # rows incl. wrap garbage
            Mrp = _round_up(Mr, 16)
            off_max = dilation * (KH - 1) * Wp + dilation * (KW - 1)
            need = Mrp + off_max
            extra_rows = max(0, need - Hp * Wp)
            extra_h = -(-extra_rows // Wp)
            Lpad = (Hp + extra_h) * Wp
            oisz = jnp.dtype(out_dtype).itemsize
            est = (2 * Lpad * tc * 2 + 2 * KH * KW * tc * tn * 2
                   + 2 * Mrp * tn * oisz + Mrp * tn * 4 + 2 * tn * 4)
            if est <= (30 << 20):
                xp = jnp.pad(x.astype(jnp.bfloat16),
                             ((0, 0), (pt, pb + extra_h), (pl_, pr_), (0, 0)))
                X2 = xp.reshape(Nb, Lpad, Cin)
                Wt = jnp.transpose(w_torch, (2, 3, 1, 0)).reshape(KH * KW, Cin, Cout)
                if scale is not None:
                    Wt = Wt * scale[None, None, :]
                Wt = Wt.astype(jnp.bfloat16)
                sh2 = shift.reshape(1, Cout)
                offs = tuple(dilation * ky * Wp + dilation * kx
                             for ky in range(KH) for kx in range(KW))
                gn, gk = Cout // tn, Cin // tc
                out = pl.pallas_call(
                    _taps_kernel(offs, relu, sigmoid, Mrp),
                    out_shape=jax.ShapeDtypeStruct((Nb, Mrp, Cout), out_dtype),
                    grid_spec=pltpu.PrefetchScalarGridSpec(
                        num_scalar_prefetch=0,
                        grid=(Nb, gn, gk),
                        in_specs=[
                            pl.BlockSpec((1, Lpad, tc), lambda b, j, k: (b, 0, k)),
                            pl.BlockSpec((KH * KW, tc, tn), lambda b, j, k: (0, k, j)),
                            pl.BlockSpec((1, tn), lambda b, j, k: (0, j)),
                        ],
                        out_specs=pl.BlockSpec((1, Mrp, tn),
                                               lambda b, j, k: (b, 0, j)),
                        scratch_shapes=(pltpu.VMEM((Mrp, tn), jnp.float32),),
                    ),
                    compiler_params=pltpu.CompilerParams(
                        dimension_semantics=("parallel", "parallel", "arbitrary"),
                        vmem_limit_bytes=_vmem_limit(est)),
                    cost_estimate=pl.CostEstimate(
                        flops=2 * Nb * Mrp * Cin * Cout * KH * KW,
                        transcendentals=Nb * Mrp * Cout if sigmoid else 0,
                        bytes_accessed=(Nb * Lpad * Cin * 2 * gn
                                        + KH * KW * Cin * Cout * 2
                                        + Nb * Mrp * Cout * oisz)),
                )(X2, Wt, sh2)
                out = out[:, :Mr, :].reshape(Nb, OH, Wp, Cout)[:, :, :OW, :]
                return out

    # ---------------- im2col fallback (strided / oversized convs) ------------
    Wm = jnp.transpose(w_torch, (2, 3, 1, 0)).reshape(KH * KW * Cin, Cout)
    if scale is not None:
        Wm = Wm * scale[None, :]
    Wm = Wm.astype(jnp.bfloat16)
    xp = jnp.pad(x.astype(jnp.bfloat16), ((0, 0), (pt, pb), (pl_, pr_), (0, 0)))
    cols = []
    for i in range(KH):
        for j in range(KW):
            cols.append(xp[:, i * dilation: i * dilation + (OH - 1) * stride + 1: stride,
                           j * dilation: j * dilation + (OW - 1) * stride + 1: stride, :])
    A = jnp.concatenate(cols, axis=-1).reshape(Nb * OH * OW, KH * KW * Cin)
    res2d = residual.reshape(Nb * OH * OW, Cout) if residual is not None else None
    out = _fused_matmul(A, Wm, shift, res2d, relu=relu, sigmoid=sigmoid,
                        res_mode=res_mode, out_dtype=out_dtype)
    return out.reshape(Nb, OH, OW, Cout)


def conv2d(x, w, bias=None, *, stride=1, padding=0, dilation=1, bn=None,
           relu=False, sigmoid=False, residual=None, res_mode=None,
           out_dtype=jnp.bfloat16):
    pad = ((padding, padding), (padding, padding)) if isinstance(padding, int) else padding
    return _conv2d_nhwc(x, w, bias, bn, residual, stride=stride, padding=pad,
                        dilation=dilation, relu=relu, sigmoid=sigmoid,
                        res_mode=res_mode, out_dtype=out_dtype)


# ----------------------------------------------------------------------------
# Transposed convolution: fused sub-pixel decomposition (one conv + shuffle)
# ----------------------------------------------------------------------------
def _subpix_params(K, s, p, H, OH, r):
    kr = (K - r + s - 1) // s
    o0 = (r - p) % s
    q_lo = (o0 + p - r) // s
    n_out = (OH - 1 - o0) // s + 1
    q_hi = q_lo + n_out - 1
    pad_l = kr - 1 - q_lo
    pad_r = q_hi - (H - 1)
    return kr, o0, n_out, pad_l, pad_r


def _conv_transpose_zero_dilate(x, w_torch, bias, *, stride, padding,
                                output_padding, bn, relu, out_dtype):
    # General fallback (zero-dilated input); not used by this network.
    wc = jnp.transpose(jnp.flip(w_torch, axis=(2, 3)), (1, 0, 2, 3))
    KH, KW = wc.shape[2], wc.shape[3]
    N, H, W, C = x.shape
    xd = jnp.zeros((N, (H - 1) * stride + 1, (W - 1) * stride + 1, C), x.dtype)
    xd = xd.at[:, ::stride, ::stride, :].set(x)
    pad_h = (KH - 1 - padding, KH - 1 - padding + output_padding)
    pad_w = (KW - 1 - padding, KW - 1 - padding + output_padding)
    return conv2d(xd, wc, bias, stride=1, padding=(pad_h, pad_w), bn=bn,
                  relu=relu, out_dtype=out_dtype)


def conv_transpose2d(x, w_torch, bias, *, stride, padding, output_padding,
                     bn=None, relu=False, out_dtype=jnp.bfloat16):
    # w_torch: torch ConvTranspose layout (Cin, Cout, KH, KW).
    Cin, Cout, KH, KW = w_torch.shape
    Nb, H, W_, _ = x.shape
    s = stride
    OH = (H - 1) * s - 2 * padding + KH + output_padding
    OW = (W_ - 1) * s - 2 * padding + KW + output_padding

    if s == 2 and OH == 2 * H and OW == 2 * W_:
        py = [_subpix_params(KH, s, padding, H, OH, r) for r in range(s)]
        px = [_subpix_params(KW, s, padding, W_, OW, r) for r in range(s)]
        ok = (all(n == H and a >= 0 and b >= 0 for (_, _, n, a, b) in py) and
              all(n == W_ and a >= 0 and b >= 0 for (_, _, n, a, b) in px))
        if ok:
            PLy = max(t[3] for t in py); PRy = max(t[4] for t in py)
            PLx = max(t[3] for t in px); PRx = max(t[4] for t in px)
            Kcy, Kcx = PLy + PRy + 1, PLx + PRx + 1
            groups = [None] * 4
            for ry in range(s):
                kry, _, _, ply, _ = py[ry]
                for rx in range(s):
                    krx, _, _, plx, _ = px[rx]
                    w_sub = w_torch[:, :, ry::s, rx::s]               # (Cin,Cout,kry,krx)
                    wc = jnp.transpose(jnp.flip(w_sub, axis=(2, 3)), (1, 0, 2, 3))
                    emb = jnp.zeros((Cout, Cin, Kcy, Kcx), wc.dtype)
                    emb = emb.at[:, :, PLy - ply:PLy - ply + kry,
                                 PLx - plx:PLx - plx + krx].set(wc)
                    g = ((ry - padding) % s) * 2 + ((rx - padding) % s)
                    groups[g] = emb
            w_big = jnp.concatenate(groups, axis=0)                   # (4*Cout,Cin,Kcy,Kcx)
            bias_big = None if bias is None else jnp.tile(bias, 4)
            bn_big = None if bn is None else tuple(jnp.tile(a, 4) for a in bn)
            y = conv2d(x, w_big, bias_big, stride=1,
                       padding=((PLy, PRy), (PLx, PRx)),
                       bn=bn_big, relu=relu, out_dtype=out_dtype)     # (Nb,H,W,4*Cout)
            y = y.reshape(Nb, H, W_, 2, 2, Cout)
            y = jnp.transpose(y, (0, 1, 3, 2, 4, 5))
            return y.reshape(Nb, 2 * H, 2 * W_, Cout)

    return _conv_transpose_zero_dilate(x, w_torch, bias, stride=stride,
                                       padding=padding,
                                       output_padding=output_padding,
                                       bn=bn, relu=relu, out_dtype=out_dtype)


# ----------------------------------------------------------------------------
# MaxPool (single-pass) and the dblock sum
# ----------------------------------------------------------------------------
@jax.jit
def maxpool_3x3_s2_p1(x):
    return lax.reduce_window(
        x, jnp.array(-jnp.inf, x.dtype), lax.max,
        window_dimensions=(1, 3, 3, 1), window_strides=(1, 2, 2, 1),
        padding=((0, 0), (1, 1), (1, 1), (0, 0)))


@jax.jit
def _sum6(x, a, b, c, d, e):
    f32 = jnp.float32
    s = (x.astype(f32) + a.astype(f32) + b.astype(f32)
         + c.astype(f32) + d.astype(f32) + e.astype(f32))
    return s.astype(x.dtype)


# ----------------------------------------------------------------------------
# Deterministic parameter construction (synthetic weights, He-style scale)
# ----------------------------------------------------------------------------
class ParamGen:
    def __init__(self, seed):
        self._key = jax.random.PRNGKey(seed)

    def _next(self):
        self._key, sub = jax.random.split(self._key)
        return sub

    def conv_w(self, cout, cin, kh, kw):
        fan_in = cin * kh * kw
        return jax.random.normal(self._next(), (cout, cin, kh, kw),
                                 jnp.float32) * math.sqrt(2.0 / fan_in)

    def convT_w(self, cin, cout, kh, kw):
        fan_in = cin * kh * kw
        return jax.random.normal(self._next(), (cin, cout, kh, kw),
                                 jnp.float32) * math.sqrt(2.0 / fan_in)

    def bias(self, c):
        return jax.random.normal(self._next(), (c,), jnp.float32) * 0.01

    def zero_bias(self, c):
        return jnp.zeros((c,), jnp.float32)

    def bn(self, c):
        gamma = 1.0 + 0.05 * jax.random.normal(self._next(), (c,), jnp.float32)
        beta = 0.05 * jax.random.normal(self._next(), (c,), jnp.float32)
        mean = 0.05 * jax.random.normal(self._next(), (c,), jnp.float32)
        var = 1.0 + 0.05 * jnp.abs(jax.random.normal(self._next(), (c,), jnp.float32))
        return (gamma, beta, mean, var)


def build_params(seed=1234):
    pg = ParamGen(seed)
    P = {}
    P["firstconv_w"] = pg.conv_w(64, 3, 7, 7)
    P["firstbn"] = pg.bn(64)

    def make_block(inp, planes, stride, down):
        d = dict(conv1_w=pg.conv_w(planes, inp, 1, 1), bn1=pg.bn(planes),
                 conv2_w=pg.conv_w(planes, planes, 3, 3), bn2=pg.bn(planes),
                 conv3_w=pg.conv_w(planes * 4, planes, 1, 1), bn3=pg.bn(planes * 4),
                 stride=stride)
        if down:
            d["down_w"] = pg.conv_w(planes * 4, inp, 1, 1)
            d["down_bn"] = pg.bn(planes * 4)
        return d

    def make_layer(inp, planes, n, stride):
        blocks = [make_block(inp, planes, stride, True)]
        for _ in range(n - 1):
            blocks.append(make_block(planes * 4, planes, 1, False))
        return blocks

    # ResNet-101: [3, 4, 23, 3] bottleneck blocks
    P["layer1"] = make_layer(64, 64, 3, 1)
    P["layer2"] = make_layer(256, 128, 4, 2)
    P["layer3"] = make_layer(512, 256, 23, 2)
    P["layer4"] = make_layer(1024, 512, 3, 2)

    P["dblock"] = {}
    for i in range(1, 6):
        P["dblock"][f"w{i}"] = pg.conv_w(2048, 2048, 3, 3)
        P["dblock"][f"b{i}"] = pg.zero_bias(2048)

    def make_decoder(in_ch, nf):
        mid = in_ch // 4
        return dict(conv1_w=pg.conv_w(mid, in_ch, 1, 1), conv1_b=pg.bias(mid), bn1=pg.bn(mid),
                    deconv2_w=pg.convT_w(mid, mid, 3, 3), deconv2_b=pg.bias(mid), bn2=pg.bn(mid),
                    conv3_w=pg.conv_w(nf, mid, 1, 1), conv3_b=pg.bias(nf), bn3=pg.bn(nf))

    P["decoder4"] = make_decoder(2048, 1024)
    P["decoder3"] = make_decoder(1024, 512)
    P["decoder2"] = make_decoder(512, 256)
    P["decoder1"] = make_decoder(256, 256)

    P["finaldeconv1_w"] = pg.convT_w(256, 32, 4, 4)
    P["finaldeconv1_b"] = pg.bias(32)
    P["finalconv2_w"] = pg.conv_w(32, 32, 3, 3)
    P["finalconv2_b"] = pg.bias(32)
    P["finalconv3_w"] = pg.conv_w(1, 32, 3, 3)
    P["finalconv3_b"] = pg.bias(1)
    return P


# ----------------------------------------------------------------------------
# Forward pass (NHWC / bf16 internally)
# ----------------------------------------------------------------------------
def run_bottleneck(x, p):
    identity = x
    out = conv2d(x, p["conv1_w"], bn=p["bn1"], relu=True)
    out = conv2d(out, p["conv2_w"], stride=p["stride"], padding=1, bn=p["bn2"], relu=True)
    if "down_w" in p:
        identity = conv2d(x, p["down_w"], stride=p["stride"], bn=p["down_bn"])
    # relu(bn3(conv3(out)) + identity) -- residual fused in the kernel epilogue
    out = conv2d(out, p["conv3_w"], bn=p["bn3"], relu=True,
                 residual=identity, res_mode="pre_act")
    return out


def run_layer(x, blocks):
    for p in blocks:
        x = run_bottleneck(x, p)
    return x


def run_dblock(x, p):
    d1 = conv2d(x, p["w1"], p["b1"], padding=1, dilation=1, relu=True)
    d2 = conv2d(d1, p["w2"], p["b2"], padding=2, dilation=2, relu=True)
    d3 = conv2d(d2, p["w3"], p["b3"], padding=4, dilation=4, relu=True)
    d4 = conv2d(d3, p["w4"], p["b4"], padding=8, dilation=8, relu=True)
    d5 = conv2d(d4, p["w5"], p["b5"], padding=16, dilation=16, relu=True)
    return _sum6(x, d1, d2, d3, d4, d5)


def run_decoder(x, p, skip=None):
    x = conv2d(x, p["conv1_w"], p["conv1_b"], bn=p["bn1"], relu=True)
    x = conv_transpose2d(x, p["deconv2_w"], p["deconv2_b"], stride=2, padding=1,
                         output_padding=1, bn=p["bn2"], relu=True)
    x = conv2d(x, p["conv3_w"], p["conv3_b"], bn=p["bn3"], relu=True,
               residual=skip, res_mode=None if skip is None else "post_act")
    return x


def dinknet101_forward(P, x_nchw):
    x = jnp.transpose(x_nchw, (0, 2, 3, 1)).astype(jnp.bfloat16)  # -> NHWC

    x = conv2d(x, P["firstconv_w"], stride=2, padding=3, bn=P["firstbn"], relu=True)
    x = maxpool_3x3_s2_p1(x)

    e1 = run_layer(x, P["layer1"])
    e2 = run_layer(e1, P["layer2"])
    e3 = run_layer(e2, P["layer3"])
    e4 = run_layer(e3, P["layer4"])

    e4 = run_dblock(e4, P["dblock"])

    d4 = run_decoder(e4, P["decoder4"], skip=e3)
    d3 = run_decoder(d4, P["decoder3"], skip=e2)
    d2 = run_decoder(d3, P["decoder2"], skip=e1)
    d1 = run_decoder(d2, P["decoder1"], skip=None)

    out = conv_transpose2d(d1, P["finaldeconv1_w"], P["finaldeconv1_b"],
                           stride=2, padding=1, output_padding=0, relu=True)
    out = conv2d(out, P["finalconv2_w"], P["finalconv2_b"], padding=1, relu=True)
    out = conv2d(out, P["finalconv3_w"], P["finalconv3_b"], padding=1,
                 sigmoid=True, out_dtype=jnp.float32)

    return jnp.transpose(out, (0, 3, 1, 2))  # -> NCHW (N, 1, H, W)


# ----------------------------------------------------------------------------
# Pure-JAX (lax) references for correctness checks
# ----------------------------------------------------------------------------
def _lax_conv(x, w_torch, stride, padding, dilation):
    w = jnp.transpose(w_torch, (2, 3, 1, 0))
    return lax.conv_general_dilated(
        x.astype(jnp.float32), w, (stride, stride), padding,
        rhs_dilation=(dilation, dilation),
        dimension_numbers=("NHWC", "HWIO", "NHWC"))


def _lax_deconv(x, w_t, stride, padding, output_padding):
    KH, KW = w_t.shape[2], w_t.shape[3]
    w = jnp.transpose(jnp.flip(w_t, (2, 3)), (2, 3, 0, 1))
    pad = ((KH - 1 - padding, KH - 1 - padding + output_padding),
           (KW - 1 - padding, KW - 1 - padding + output_padding))
    return lax.conv_general_dilated(
        x.astype(jnp.float32), w, (1, 1), pad, lhs_dilation=(stride, stride),
        dimension_numbers=("NHWC", "HWIO", "NHWC"))


def _bn_ref(y, bn):
    g, b, m, v = bn
    return (y - m) * (g * lax.rsqrt(v + 1e-5)) + b


def _relerr(a, b):
    return float(jnp.max(jnp.abs(a.astype(jnp.float32) - b))
                 / (jnp.max(jnp.abs(b)) + 1e-8))


# ----------------------------------------------------------------------------
if __name__ == "__main__":
    # -------- kernel unit tests against pure-JAX references (bf16 tolerance) -
    pgt = ParamGen(7)
    key = jax.random.PRNGKey(0)
    k1, k2, k3, key = jax.random.split(key, 4)
    xt = jax.random.normal(k1, (2, 14, 14, 64), jnp.float32)

    # 1) dilated 3x3 conv + BN + ReLU          (in-kernel tap extraction path)
    w1 = pgt.conv_w(128, 64, 3, 3); bn1 = pgt.bn(128)
    got = conv2d(xt, w1, None, padding=2, dilation=2, bn=bn1, relu=True,
                 out_dtype=jnp.float32)
    ref = jnp.maximum(_bn_ref(_lax_conv(xt, w1, 1, ((2, 2), (2, 2)), 2), bn1), 0.0)
    assert _relerr(got, ref) < 0.06, ("taps-path conv mismatch", _relerr(got, ref))

    # 2) strided 3x3 conv + BN + ReLU                      (im2col matmul path)
    w2 = pgt.conv_w(128, 64, 3, 3); bn2 = pgt.bn(128)
    got = conv2d(xt, w2, None, stride=2, padding=1, bn=bn2, relu=True,
                 out_dtype=jnp.float32)
    ref = jnp.maximum(_bn_ref(_lax_conv(xt, w2, 2, ((1, 1), (1, 1)), 1), bn2), 0.0)
    assert _relerr(got, ref) < 0.06, ("strided conv mismatch", _relerr(got, ref))

    # 3) 1x1 conv + BN + fused pre-activation residual (bottleneck epilogue)
    w3 = pgt.conv_w(256, 64, 1, 1); bn3 = pgt.bn(256)
    res = jax.random.normal(k2, (2, 14, 14, 256), jnp.float32).astype(jnp.bfloat16)
    got = conv2d(xt, w3, None, bn=bn3, relu=True, residual=res,
                 res_mode="pre_act", out_dtype=jnp.float32)
    ref = jnp.maximum(_bn_ref(_lax_conv(xt, w3, 1, ((0, 0), (0, 0)), 1), bn3)
                      + res.astype(jnp.float32), 0.0)
    assert _relerr(got, ref) < 0.06, ("residual 1x1 mismatch", _relerr(got, ref))

    # 4) 3x3 s2 transposed conv + BN + ReLU     (fused sub-pixel deconv, K=2)
    wd = pgt.convT_w(64, 64, 3, 3); bd = pgt.bias(64); bnd = pgt.bn(64)
    got = conv_transpose2d(xt, wd, bd, stride=2, padding=1, output_padding=1,
                           bn=bnd, relu=True, out_dtype=jnp.float32)
    ref = jnp.maximum(_bn_ref(_lax_deconv(xt, wd, 2, 1, 1) + bd, bnd), 0.0)
    assert _relerr(got, ref) < 0.06, ("deconv3x3 mismatch", _relerr(got, ref))

    # 5) 4x4 s2 transposed conv + bias + ReLU   (fused sub-pixel deconv, K=3)
    x5 = jax.random.normal(k3, (1, 6, 6, 32), jnp.float32)
    wd4 = pgt.convT_w(32, 16, 4, 4); bd4 = pgt.bias(16)
    got = conv_transpose2d(x5, wd4, bd4, stride=2, padding=1, output_padding=0,
                           relu=True, out_dtype=jnp.float32)
    ref = jnp.maximum(_lax_deconv(x5, wd4, 2, 1, 0) + bd4, 0.0)
    assert _relerr(got, ref) < 0.06, ("deconv4x4 mismatch", _relerr(got, ref))

    # ----------------------- full DinkNet101 forward -------------------------
    params = build_params(seed=1234)
    # Input spatial must be a multiple of 32 (5 stride-2 stages); keep it small.
    x = jax.random.normal(jax.random.PRNGKey(0), (2, 3, 32, 32), jnp.float32)

    out = dinknet101_forward(params, x)
    out = jax.block_until_ready(out)

    assert out.shape == (2, 1, 32, 32), out.shape
    assert bool(jnp.all(jnp.isfinite(out)))
    assert bool(jnp.all((out >= 0.0) & (out <= 1.0)))  # sigmoid output
    print("KERNEL_OK")
</pallas_src>

<mosaic_0001>
module attributes {stable_mosaic.version = 11 : i64} {
  func.func @kernel(%arg0: i32, %arg1: i32, %arg2: i32, %arg3: memref<1x342x64xbf16, #tpu.memory_space<vmem>>, %arg4: memref<9x64x128xbf16, #tpu.memory_space<vmem>>, %arg5: memref<1x128xf32, #tpu.memory_space<vmem>>, %arg6: memref<1x256x128xf32, #tpu.memory_space<vmem>>, %arg7: memref<256x128xf32, #tpu.memory_space<vmem>>) attributes {dimension_semantics = [#tpu.dimension_semantics<parallel>, #tpu.dimension_semantics<parallel>, #tpu.dimension_semantics<arbitrary>], iteration_bounds = array<i64: 2, 1, 1>, scalar_prefetch = 0 : i64, scratch_operands = 1 : i64, tpu.core_type = #tpu.core_type<tc>, window_params = [{transform_indices = @transform_0, window_bounds = array<i64: 1, 342, 64>}, {transform_indices = @transform_1, window_bounds = array<i64: 9, 64, 128>}, {transform_indices = @transform_2, window_bounds = array<i64: 1, 128>}, {transform_indices = @transform_3, window_bounds = array<i64: 1, 256, 128>}]} {
    %c0_i32 = arith.constant 0 : i32
    %0 = arith.cmpi eq, %arg2, %c0_i32 : i32
    %1 = arith.extui %0 : i1 to i32
    %c0_i32_0 = arith.constant 0 : i32
    %2 = arith.cmpi ne, %1, %c0_i32_0 : i32
    scf.if %2 {
      %cst_86 = arith.constant 0.000000e+00 : f32
      %78 = vector.broadcast %cst_86 : f32 to vector<256x128xf32>
      %c0_87 = arith.constant 0 : index
      %c0_88 = arith.constant 0 : index
      %79 = vector.load %arg7[%c0_87, %c0_88] : memref<256x128xf32, #tpu.memory_space<vmem>>, vector<256x128xf32>
      tpu.vector_store %arg7[%c0_87, %c0_88], %78 {strides = array<i32>} : memref<256x128xf32, #tpu.memory_space<vmem>>, vector<256x128xf32>,
    } else {
    }
    %c0 = arith.constant 0 : index
    %c0_1 = arith.constant 0 : index
    %c0_2 = arith.constant 0 : index
    %3 = vector.load %arg3[%c0, %c0_1, %c0_2] : memref<1x342x64xbf16, #tpu.memory_space<vmem>>, vector<1x256x64xbf16>
    %4 = vector.shape_cast %3 : vector<1x256x64xbf16> to vector<256x64xbf16>
    %c0_3 = arith.constant 0 : index
    %c0_4 = arith.constant 0 : index
    %5 = vector.load %arg7[%c0_3, %c0_4] : memref<256x128xf32, #tpu.memory_space<vmem>>, vector<256x128xf32>
    %c0_5 = arith.constant 0 : index
    %c0_6 = arith.constant 0 : index
    %c0_7 = arith.constant 0 : index
    %6 = vector.load %arg4[%c0_5, %c0_6, %c0_7] : memref<9x64x128xbf16, #tpu.memory_space<vmem>>, vector<1x64x128xbf16>
    %7 = vector.shape_cast %6 : vector<1x64x128xbf16> to vector<64x128xbf16>
    %cst = arith.constant dense<0.000000e+00> : vector<256x128xf32>
    %8 = tpu.matmul %4, %7, %cst {dimension_numbers = #tpu.dot_dimension_numbers<[1], [0], [0], [1], [0, 0, 1, 1], [], []>} : vector<256x64xbf16>, vector<64x128xbf16>, vector<256x128xf32> -> vector<256x128xf32>
    %9 = arith.addf %5, %8 : vector<256x128xf32>
    %c0_8 = arith.constant 0 : index
    %c0_9 = arith.constant 0 : index
    %10 = vector.load %arg7[%c0_8, %c0_9] : memref<256x128xf32, #tpu.memory_space<vmem>>, vector<256x128xf32>
    tpu.vector_store %arg7[%c0_8, %c0_9], %9 {strides = array<i32>} : memref<256x128xf32, #tpu.memory_space<vmem>>, vector<256x128xf32>,
    %c0_10 = arith.constant 0 : index
    %c2 = arith.constant 2 : index
    %c0_11 = arith.constant 0 : index
    %11 = vector.load %arg3[%c0_10, %c2, %c0_11] : memref<1x342x64xbf16, #tpu.memory_space<vmem>>, vector<1x256x64xbf16>
    %12 = vector.shape_cast %11 : vector<1x256x64xbf16> to vector<256x64xbf16>
    %c0_12 = arith.constant 0 : index
    %c0_13 = arith.constant 0 : index
    %13 = vector.load %arg7[%c0_12, %c0_13] : memref<256x128xf32, #tpu.memory_space<vmem>>, vector<256x128xf32>
    %c1 = arith.constant 1 : index
    %c0_14 = arith.constant 0 : index
    %c0_15 = arith.constant 0 : index
    %14 = vector.load %arg4[%c1, %c0_14, %c0_15] : memref<9x64x128xbf16, #tpu.memory_space<vmem>>, vector<1x64x128xbf16>
    %15 = vector.shape_cast %14 : vector<1x64x128xbf16> to vector<64x128xbf16>
    %cst_16 = arith.constant dense<0.000000e+00> : vector<256x128xf32>
    %16 = tpu.matmul %12, %15, %cst_16 {dimension_numbers = #tpu.dot_dimension_numbers<[1], [0], [0], [1], [0, 0, 1, 1], [], []>} : vector<256x64xbf16>, vector<64x128xbf16>, vector<256x128xf32> -> vector<256x128xf32>
    %17 = arith.addf %13, %16 : vector<256x128xf32>
    %c0_17 = arith.constant 0 : index
    %c0_18 = arith.constant 0 : index
    %18 = vector.load %arg7[%c0_17, %c0_18] : memref<256x128xf32, #tpu.memory_space<vmem>>, vector<256x128xf32>
    tpu.vector_store %arg7[%c0_17, %c0_18], %17 {strides = array<i32>} : memref<256x128xf32, #tpu.memory_space<vmem>>, vector<256x128xf32>,
    %c0_19 = arith.constant 0 : index
    %c4 = arith.constant 4 : index
    %c0_20 = arith.constant 0 : index
    %19 = vector.load %arg3[%c0_19, %c4, %c0_20] : memref<1x342x64xbf16, #tpu.memory_space<vmem>>, vector<1x256x64xbf16>
    %20 = vector.shape_cast %19 : vector<1x256x64xbf16> to vector<256x64xbf16>
    %c0_21 = arith.constant 0 : index
    %c0_22 = arith.constant 0 : index
    %21 = vector.load %arg7[%c0_21, %c0_22] : memref<256x128xf32, #tpu.memory_space<vmem>>, vector<256x128xf32>
    %c2_23 = arith.constant 2 : index
    %c0_24 = arith.constant 0 : index
    %c0_25 = arith.constant 0 : index
    %22 = vector.load %arg4[%c2_23, %c0_24, %c0_25] : memref<9x64x128xbf16, #tpu.memory_space<vmem>>, vector<1x64x128xbf16>
    %23 = vector.shape_cast %22 : vector<1x64x128xbf16> to vector<64x128xbf16>
    %cst_26 = arith.constant dense<0.000000e+00> : vector<256x128xf32>
    %24 = tpu.matmul %20, %23, %cst_26 {dimension_numbers = #tpu.dot_dimension_numbers<[1], [0], [0], [1], [0, 0, 1, 1], [], []>} : vector<256x64xbf16>, vector<64x128xbf16>, vector<256x128xf32> -> vector<256x128xf32>
    %25 = arith.addf %21, %24 : vector<256x128xf32>
    %c0_27 = arith.constant 0 : index
    %c0_28 = arith.constant 0 : index
    %26 = vector.load %arg7[%c0_27, %c0_28] : memref<256x128xf32, #tpu.memory_space<vmem>>, vector<256x128xf32>
    tpu.vector_store %arg7[%c0_27, %c0_28], %25 {strides = array<i32>} : memref<256x128xf32, #tpu.memory_space<vmem>>, vector<256x128xf32>,
    %c0_29 = arith.constant 0 : index
    %c36 = arith.constant 36 : index
    %c0_30 = arith.constant 0 : index
    %27 = vector.load %arg3[%c0_29, %c36, %c0_30] : memref<1x342x64xbf16, #tpu.memory_space<vmem>>, vector<1x256x64xbf16>
    %28 = vector.shape_cast %27 : vector<1x256x64xbf16> to vector<256x64xbf16>
    %c0_31 = arith.constant 0 : index
    %c0_32 = arith.constant 0 : index
    %29 = vector.load %arg7[%c0_31, %c0_32] : memref<256x128xf32, #tpu.memory_space<vmem>>, vector<256x128xf32>
    %c3 = arith.constant 3 : index
    %c0_33 = arith.constant 0 : index
    %c0_34 = arith.constant 0 : index
    %30 = vector.load %arg4[%c3, %c0_33, %c0_34] : memref<9x64x128xbf16, #tpu.memory_space<vmem>>, vector<1x64x128xbf16>
    %31 = vector.shape_cast %30 : vector<1x64x128xbf16> to vector<64x128xbf16>
    %cst_35 = arith.constant dense<0.000000e+00> : vector<256x128xf32>
    %32 = tpu.matmul %28, %31, %cst_35 {dimension_numbers = #tpu.dot_dimension_numbers<[1], [0], [0], [1], [0, 0, 1, 1], [], []>} : vector<256x64xbf16>, vector<64x128xbf16>, vector<256x128xf32> -> vector<256x128xf32>
    %33 = arith.addf %29, %32 : vector<256x128xf32>
    %c0_36 = arith.constant 0 : index
    %c0_37 = arith.constant 0 : index
    %34 = vector.load %arg7[%c0_36, %c0_37] : memref<256x128xf32, #tpu.memory_space<vmem>>, vector<256x128xf32>
    tpu.vector_store %arg7[%c0_36, %c0_37], %33 {strides = array<i32>} : memref<256x128xf32, #tpu.memory_space<vmem>>, vector<256x128xf32>,
    %c0_38 = arith.constant 0 : index
    %c38 = arith.constant 38 : index
    %c0_39 = arith.constant 0 : index
    %35 = vector.load %arg3[%c0_38, %c38, %c0_39] : memref<1x342x64xbf16, #tpu.memory_space<vmem>>, vector<1x256x64xbf16>
    %36 = vector.shape_cast %35 : vector<1x256x64xbf16> to vector<256x64xbf16>
    %c0_40 = arith.constant 0 : index
    %c0_41 = arith.constant 0 : index
    %37 = vector.load %arg7[%c0_40, %c0_41] : memref<256x128xf32, #tpu.memory_space<vmem>>, vector<256x128xf32>
    %c4_42 = arith.constant 4 : index
    %c0_43 = arith.constant 0 : index
    %c0_44 = arith.constant 0 : index
    %38 = vector.load %arg4[%c4_42, %c0_43, %c0_44] : memref<9x64x128xbf16, #tpu.memory_space<vmem>>, vector<1x64x128xbf16>
    %39 = vector.shape_cast %38 : vector<1x64x128xbf16> to vector<64x128xbf16>
    %cst_45 = arith.constant dense<0.000000e+00> : vector<256x128xf32>
    %40 = tpu.matmul %36, %39, %cst_45 {dimension_numbers = #tpu.dot_dimension_numbers<[1], [0], [0], [1], [0, 0, 1, 1], [], []>} : vector<256x64xbf16>, vector<64x128xbf16>, vector<256x128xf32> -> vector<256x128xf32>
    %41 = arith.addf %37, %40 : vector<256x128xf32>
    %c0_46 = arith.constant 0 : index
    %c0_47 = arith.constant 0 : index
    %42 = vector.load %arg7[%c0_46, %c0_47] : memref<256x128xf32, #tpu.memory_space<vmem>>, vector<256x128xf32>
    tpu.vector_store %arg7[%c0_46, %c0_47], %41 {strides = array<i32>} : memref<256x128xf32, #tpu.memory_space<vmem>>, vector<256x128xf32>,
    %c0_48 = arith.constant 0 : index
    %c40 = arith.constant 40 : index
    %c0_49 = arith.constant 0 : index
    %43 = vector.load %arg3[%c0_48, %c40, %c0_49] : memref<1x342x64xbf16, #tpu.memory_space<vmem>>, vector<1x256x64xbf16>
    %44 = vector.shape_cast %43 : vector<1x256x64xbf16> to vector<256x64xbf16>
    %c0_50 = arith.constant 0 : index
    %c0_51 = arith.constant 0 : index
    %45 = vector.load %arg7[%c0_50, %c0_51] : memref<256x128xf32, #tpu.memory_space<vmem>>, vector<256x128xf32>
    %c5 = arith.constant 5 : index
    %c0_52 = arith.constant 0 : index
    %c0_53 = arith.constant 0 : index
    %46 = vector.load %arg4[%c5, %c0_52, %c0_53] : memref<9x64x128xbf16, #tpu.memory_space<vmem>>, vector<1x64x128xbf16>
    %47 = vector.shape_cast %46 : vector<1x64x128xbf16> to vector<64x128xbf16>
    %cst_54 = arith.constant dense<0.000000e+00> : vector<256x128xf32>
    %48 = tpu.matmul %44, %47, %cst_54 {dimension_numbers = #tpu.dot_dimension_numbers<[1], [0], [0], [1], [0, 0, 1, 1], [], []>} : vector<256x64xbf16>, vector<64x128xbf16>, vector<256x128xf32> -> vector<256x128xf32>
    %49 = arith.addf %45, %48 : vector<256x128xf32>
    %c0_55 = arith.constant 0 : index
    %c0_56 = arith.constant 0 : index
    %50 = vector.load %arg7[%c0_55, %c0_56] : memref<256x128xf32, #tpu.memory_space<vmem>>, vector<256x128xf32>
    tpu.vector_store %arg7[%c0_55, %c0_56], %49 {strides = array<i32>} : memref<256x128xf32, #tpu.memory_space<vmem>>, vector<256x128xf32>,
    %c0_57 = arith.constant 0 : index
    %c72 = arith.constant 72 : index
    %c0_58 = arith.constant 0 : index
    %51 = vector.load %arg3[%c0_57, %c72, %c0_58] : memref<1x342x64xbf16, #tpu.memory_space<vmem>>, vector<1x256x64xbf16>
    %52 = vector.shape_cast %51 : vector<1x256x64xbf16> to vector<256x64xbf16>
    %c0_59 = arith.constant 0 : index
    %c0_60 = arith.constant 0 : index
    %53 = vector.load %arg7[%c0_59, %c0_60] : memref<256x128xf32, #tpu.memory_space<vmem>>, vector<256x128xf32>
    %c6 = arith.constant 6 : index
    %c0_61 = arith.constant 0 : index
    %c0_62 = arith.constant 0 : index
    %54 = vector.load %arg4[%c6, %c0_61, %c0_62] : memref<9x64x128xbf16, #tpu.memory_space<vmem>>, vector<1x64x128xbf16>
    %55 = vector.shape_cast %54 : vector<1x64x128xbf16> to vector<64x128xbf16>
    %cst_63 = arith.constant dense<0.000000e+00> : vector<256x128xf32>
    %56 = tpu.matmul %52, %55, %cst_63 {dimension_numbers = #tpu.dot_dimension_numbers<[1], [0], [0], [1], [0, 0, 1, 1], [], []>} : vector<256x64xbf16>, vector<64x128xbf16>, vector<256x128xf32> -> vector<256x128xf32>
    %57 = arith.addf %53, %56 : vector<256x128xf32>
    %c0_64 = arith.constant 0 : index
    %c0_65 = arith.constant 0 : index
    %58 = vector.load %arg7[%c0_64, %c0_65] : memref<256x128xf32, #tpu.memory_space<vmem>>, vector<256x128xf32>
    tpu.vector_store %arg7[%c0_64, %c0_65], %57 {strides = array<i32>} : memref<256x128xf32, #tpu.memory_space<vmem>>, vector<256x128xf32>,
    %c0_66 = arith.constant 0 : index
    %c74 = arith.constant 74 : index
    %c0_67 = arith.constant 0 : index
    %59 = vector.load %arg3[%c0_66, %c74, %c0_67] : memref<1x342x64xbf16, #tpu.memory_space<vmem>>, vector<1x256x64xbf16>
    %60 = vector.shape_cast %59 : vector<1x256x64xbf16> to vector<256x64xbf16>
    %c0_68 = arith.constant 0 : index
    %c0_69 = arith.constant 0 : index
    %61 = vector.load %arg7[%c0_68, %c0_69] : memref<256x128xf32, #tpu.memory_space<vmem>>, vector<256x128xf32>
    %c7 = arith.constant 7 : index
    %c0_70 = arith.constant 0 : index
    %c0_71 = arith.constant 0 : index
    %62 = vector.load %arg4[%c7, %c0_70, %c0_71] : memref<9x64x128xbf16, #tpu.memory_space<vmem>>, vector<1x64x128xbf16>
    %63 = vector.shape_cast %62 : vector<1x64x128xbf16> to vector<64x128xbf16>
    %cst_72 = arith.constant dense<0.000000e+00> : vector<256x128xf32>
    %64 = tpu.matmul %60, %63, %cst_72 {dimension_numbers = #tpu.dot_dimension_numbers<[1], [0], [0], [1], [0, 0, 1, 1], [], []>} : vector<256x64xbf16>, vector<64x128xbf16>, vector<256x128xf32> -> vector<256x128xf32>
    %65 = arith.addf %61, %64 : vector<256x128xf32>
    %c0_73 = arith.constant 0 : index
    %c0_74 = arith.constant 0 : index
    %66 = vector.load %arg7[%c0_73, %c0_74] : memref<256x128xf32, #tpu.memory_space<vmem>>, vector<256x128xf32>
    tpu.vector_store %arg7[%c0_73, %c0_74], %65 {strides = array<i32>} : memref<256x128xf32, #tpu.memory_space<vmem>>, vector<256x128xf32>,
    %c0_75 = arith.constant 0 : index
    %c76 = arith.constant 76 : index
    %c0_76 = arith.constant 0 : index
    %67 = vector.load %arg3[%c0_75, %c76, %c0_76] : memref<1x342x64xbf16, #tpu.memory_space<vmem>>, vector<1x256x64xbf16>
    %68 = vector.shape_cast %67 : vector<1x256x64xbf16> to vector<256x64xbf16>
    %c0_77 = arith.constant 0 : index
    %c0_78 = arith.constant 0 : index
    %69 = vector.load %arg7[%c0_77, %c0_78] : memref<256x128xf32, #tpu.memory_space<vmem>>, vector<256x128xf32>
    %c8 = arith.constant 8 : index
    %c0_79 = arith.constant 0 : index
    %c0_80 = arith.constant 0 : index
    %70 = vector.load %arg4[%c8, %c0_79, %c0_80] : memref<9x64x128xbf16, #tpu.memory_space<vmem>>, vector<1x64x128xbf16>
    %71 = vector.shape_cast %70 : vector<1x64x128xbf16> to vector<64x128xbf16>
    %cst_81 = arith.constant dense<0.000000e+00> : vector<256x128xf32>
    %72 = tpu.matmul %68, %71, %cst_81 {dimension_numbers = #tpu.dot_dimension_numbers<[1], [0], [0], [1], [0, 0, 1, 1], [], []>} : vector<256x64xbf16>, vector<64x128xbf16>, vector<256x128xf32> -> vector<256x128xf32>
    %73 = arith.addf %69, %72 : vector<256x128xf32>
    %c0_82 = arith.constant 0 : index
    %c0_83 = arith.constant 0 : index
    %74 = vector.load %arg7[%c0_82, %c0_83] : memref<256x128xf32, #tpu.memory_space<vmem>>, vector<256x128xf32>
    tpu.vector_store %arg7[%c0_82, %c0_83], %73 {strides = array<i32>} : memref<256x128xf32, #tpu.memory_space<vmem>>, vector<256x128xf32>,
    %c0_i32_84 = arith.constant 0 : i32
    %75 = arith.cmpi eq, %arg2, %c0_i32_84 : i32
    %76 = arith.extui %75 : i1 to i32
    %c0_i32_85 = arith.constant 0 : i32
    %77 = arith.cmpi ne, %76, %c0_i32_85 : i32
    scf.if %77 {
      %c0_86 = arith.constant 0 : index
      %c0_87 = arith.constant 0 : index
      %78 = vector.load %arg7[%c0_86, %c0_87] : memref<256x128xf32, #tpu.memory_space<vmem>>, vector<256x128xf32>
      %c0_88 = arith.constant 0 : index
      %c0_89 = arith.constant 0 : index
      %79 = vector.load %arg5[%c0_88, %c0_89] : memref<1x128xf32, #tpu.memory_space<vmem>>, vector<1x128xf32>
      %80 = vector.broadcast %79 : vector<1x128xf32> to vector<256x128xf32>
      %81 = arith.addf %78, %80 : vector<256x128xf32>
      %cst_90 = arith.constant 0.000000e+00 : f32
      %82 = vector.broadcast %cst_90 : f32 to vector<256x128xf32>
      %83 = arith.maximumf %81, %82 : vector<256x128xf32>
      %c0_91 = arith.constant 0 : index
      %c0_92 = arith.constant 0 : index
      %c0_93 = arith.constant 0 : index
      %84 = vector.load %arg6[%c0_91, %c0_92, %c0_93] : memref<1x256x128xf32, #tpu.memory_space<vmem>>, vector<1x256x128xf32>
      %85 = vector.shape_cast %84 : vector<1x256x128xf32> to vector<256x128xf32>
      %86 = vector.shape_cast %83 : vector<256x128xf32> to vector<1x256x128xf32>
      tpu.vector_store %arg6[%c0_91, %c0_92, %c0_93], %86 {strides = array<i32>} : memref<1x256x128xf32, #tpu.memory_space<vmem>>, vector<1x256x128xf32>,
    } else {
    }
    return
  }
  func.func @transform_0(%arg0: i32, %arg1: i32, %arg2: i32) -> (i32, i32, i32) {
    %c0_i32 = arith.constant 0 : i32
    %c0_i32_0 = arith.constant 0 : i32
    return %arg0, %c0_i32, %arg2 : i32, i32, i32
  }
  func.func @transform_1(%arg0: i32, %arg1: i32, %arg2: i32) -> (i32, i32, i32) {
    %c0_i32 = arith.constant 0 : i32
    %c0_i32_0 = arith.constant 0 : i32
    return %c0_i32, %arg2, %arg1 : i32, i32, i32
  }
  func.func @transform_2(%arg0: i32, %arg1: i32, %arg2: i32) -> (i32, i32) {
    %c0_i32 = arith.constant 0 : i32
    %c0_i32_0 = arith.constant 0 : i32
    return %c0_i32, %arg1 : i32, i32
  }
  func.func @transform_3(%arg0: i32, %arg1: i32, %arg2: i32) -> (i32, i32, i32) {
    %c0_i32 = arith.constant 0 : i32
    %c0_i32_0 = arith.constant 0 : i32
    return %arg0, %c0_i32, %arg1 : i32, i32, i32
  }
}

</mosaic_0001>

<bundles_post_ra>
// kernel: _conv2d_nhwc.1
= control target key start
LH: loop header
LB: loop body
LE: loop exit
PB: predicated region body
PF: predicated region fallthrough
CT: control target
= control target key end

     0   :  { %s6294_s12 = smov 0   ;;  %s6296_s13 = smov 0   ;;  %s6949_s0 = inlined_call_operand.vmem [shape: bf16[2,342,64], index: 0, kind: input, shape index: {}]   ;;  %s6950_s1 = inlined_call_operand.vmem [shape: bf16[9,64,128], index: 1, kind: input, shape index: {}]   ;;  %s6951_s2 = inlined_call_operand.vmem [shape: f32[1,128], index: 2, kind: input, shape index: {}]   ;;  %s6952_s3 = inlined_call_operand.vmem [shape: f32[2,256,128], index: 3, kind: output, shape index: {}]  }
   0x1   :  { %s6298_s14 = smov 0  }
   0x2 LB: > { %s32_s15 = sadd.s32 1, %s6268_s13  ;;  %p4829_p0 = scmp.ge.s32.totalorder %s6272_s14, 1  ;;  %s6272_s14 = sphi %s6298_s14, %s13_s14   ;;  %s6268_s13 = sphi %s6296_s13, %s6954_s13   ;;  %s6264_s12 = sphi %s6294_s12, %s6953_s12  }
   0x3   : > { %p34_p1 = scmp.ge.s32.totalorder %s32_s15, 2  ;;  %p187_p2 = scmp.lt.s32.totalorder %s6272_s14, 3 }
   0x5   : > { %s6956_s15 = smov (%p34_p1, %s32_s15), 0  ;;  %p188_p3 = pnand %p4829_p0, %p187_p2 }
   0x6   : > { %v6060_v0 = vld [vmem:[%s6950_s1] sm:$0xff] (!%p188_p3)   ;;  %p228_p4 = scmp.lt.s32.totalorder (!%p188_p3), %s6264_s12, 1  ;;  %v6062_v2 = vld [vmem:[%s6950_s1 + $0x8] sm:$0xff] (!%p188_p3)   ;;  %v6064_v4 = vld [vmem:[%s6950_s1 + $0x10] sm:$0xff] (!%p188_p3)   ;;  %vm469_vm0 = vcmask (!%p188_p3), 523264   ;;  %vm2363_vm1 = vcmask (!%p188_p3), 1044480  }
   0x7   : > { %191 = sbr.rel (%p188_p3) target bundleno = 526 (0x20e), region = 32  ;;  %v6061_v1 = vld [vmem:[%s6950_s1 + $0x80] sm:$0xff] (!%p188_p3)   ;;  %5411 = vmatprep.subr.bf16.mxu1 (!%p188_p3), %v6060_v0  ;;  %v6063_v3 = vld [vmem:[%s6950_s1 + $0x88] sm:$0xff] (!%p188_p3)   ;;  %v6065_v5 = vld [vmem:[%s6950_s1 + $0x90] sm:$0xff] (!%p188_p3)   ;;  %vm900_vm2 = vcmask (!%p188_p3), 1046528   ;;  %vm1388_vm3 = vcmask (!%p188_p3), 1045504  }
   0x8   : > { %5571 = vmatprep.subr.bf16.mxu0 (!%p188_p3), %v6061_v1  ;;  %5412 = vmatpush3.bf16.msra.mxu1 (!%p188_p3), %v6060_v0  ;;  %v6066_v6 = vld [vmem:[%s6950_s1 + $0x18] sm:$0xff] (!%p188_p3)   ;;  %v6072_v14 = vld [vmem:[%s6950_s1 + $0x20] sm:$0xff] (!%p188_p3)   ;;  %v6079_v24 = vld [vmem:[%s6950_s1 + $0xa8] sm:$0xff] (!%p188_p3)  }
   0x9   : > { %5572 = vmatpush3.bf16.msra.mxu0 (!%p188_p3), %v6061_v1  ;;  %5413 = vmatprep.subr.bf16.mxu1 (!%p188_p3), %v6062_v2  ;;  %v6067_v7 = vld [vmem:[%s6950_s1 + $0x98] sm:$0xff] (!%p188_p3)   ;;  %v6074_v17 = vld [vmem:[%s6950_s1 + $0xa0] sm:$0xff] (!%p188_p3)   ;;  %v6083_v32 = vld [vmem:[%s6950_s1 + $0x28] sm:$0xff] (!%p188_p3)  }
   0xa   : > { %5573 = vmatprep.subr.bf16.mxu0 (!%p188_p3), %v6063_v3  ;;  %v6085_v35 = vld [vmem:[%s6950_s1 + $0xb0] sm:$0xff] (!%p188_p3)   ;;  %v6090_v41 = vld [vmem:[%s6950_s1 + $0xb8] sm:$0xff] (!%p188_p3)   ;;  %v6096_v47 = vld [vmem:[%s6950_s1 + $0xc0] sm:$0xff] (!%p188_p3)  }
   0xb   : > { %v6094_v45 = vld [vmem:[%s6950_s1 + $0x30] sm:$0xff] (!%p188_p3)   ;;  %v6104_v53 = vld [vmem:[%s6950_s1 + $0x38] sm:$0xff] (!%p188_p3)   ;;  %v6106_v57 = vld [vmem:[%s6950_s1 + $0xc8] sm:$0xff] (!%p188_p3)  }
   0xc   : > { %5414 = vmatpush3.bf16.msra.mxu1 (!%p188_p3), %v6062_v2  ;;  %v6115_v62 = vld [vmem:[%s6950_s1 + $0x40] sm:$0xff] (!%p188_p3)   ;;  %v6117_v63 = vld [vmem:[%s6950_s1 + $0xd0] sm:$0xff] (!%p188_p3)  }
   0xd   : > { %5574 = vmatpush3.bf16.msra.mxu0 (!%p188_p3), %v6063_v3  ;;  %5415 = vmatprep.subr.bf16.mxu1 (!%p188_p3), %v6064_v4 }
   0xe   : > { %s6958_s12 = smov (!%p228_p4, %s6264_s12), 1  ;;  %5575 = vmatprep.subr.bf16.mxu0 %v6065_v5 }
   0xf   : > { %s6035_s26 = smul.u32 172, %s6958_s12  ;;  %s5230_s7 = sshll.u32 %s6958_s12, 8 }
  0x10   : > { %5416 = vmatpush3.bf16.msra.mxu1 %v6064_v4  ;;  %s6871_s11 = scalar_lea.vmem %s6952_s3, %s5230_s7 }
  0x11   : > { %s6342_s8 = scalar_lea.vmem %s6949_s0, %s6035_s26  ;;  %5576 = vmatpush3.bf16.msra.mxu0 %v6065_v5  ;;  %5417 = vmatprep.subr.bf16.mxu1 %v6066_v6 }
  0x12   : > { %v6068_v8 = vld [vmem:[%s6342_s8] sm:$0xff]   ;;  %v6069_v9 = vld [vmem:[%s6342_s8 + $0x10] sm:$0xf8]   ;;  %v6070_v10 = vld [vmem:[%s6342_s8 + $0x18] sm:$0xff]   ;;  %5577 = vmatprep.subr.bf16.mxu0 %v6067_v7 }
  0x13   : > { %5419 = vmatprep.mubr.msk.bf16.mxu1 %vm469_vm0, %v6068_v8  ;;  %v2364_v11 = vrot.slane %v6069_v9, 3  ;;  %v2365_v12 = vrot.slane %v6070_v10, 3  ;;  %v6071_v13 = vld [vmem:[%s6342_s8 + $0x8] sm:$0xff]   ;;  %v6073_v16 = vld [vmem:[%s6342_s8 + $0x20] sm:$0xff]   ;;  %v6075_v19 = vld [vmem:[%s6342_s8 + $0x10] sm:$0xff]  }
  0x14   : > { %5418 = vmatpush3.bf16.msra.mxu1 %v6066_v6  ;;  %v2367_v18 = vrot.slane %v6073_v16, 3  ;;  %v6076_v20 = vld [vmem:[%s6342_s8 + $0x28] sm:$0xff]   ;;  %v6078_v23 = vld [vmem:[%s6342_s8 + $0x30] sm:$0xff]   ;;  %v6077_v26 = vld [vmem:[%s6342_s8 + $0x18] sm:$0xff]  }
  0x15   : > { %v2366_v15 = vsel %vm2363_vm1, %v2364_v11, %v2365_v12  ;;  %5578 = vmatpush3.bf16.msra.mxu0 %v6067_v7  ;;  %5451 = vmatprep.subr.bf16.mxu1 %v6072_v14  ;;  %v2369_v22 = vrot.slane %v6076_v20, 3  ;;  %v2371_v27 = vrot.slane %v6078_v23, 3  ;;  %v6081_v28 = vld [vmem:[%s6342_s8 + $0x38] sm:$0xff]   ;;  %v6080_v29 = vld [vmem:[%s6342_s8 + $0x20] sm:$0xff]   ;;  %v6087_v37 = vld [vmem:[%s6342_s8 + $0x48] sm:$0xff]  }
  0x16   : > { %5579 = vmatprep.mubr.msk.bf16.mxu0 %vm469_vm0, %v2366_v15  ;;  %5611 = vmatprep.subr.bf16.mxu0 %v6074_v17  ;;  %v2368_v21 = vsel %vm2363_vm1, %v2365_v12, %v2367_v18  ;;  %v2373_v31 = vrot.slane %v6081_v28, 3  ;;  %v6084_v33 = vld [vmem:[%s6342_s8 + $0x40] sm:$0xff]   ;;  %v6082_v38 = vld [vmem:[%s6342_s8 + $0x28] sm:$0xff]   ;;  %v6086_v39 = vld [vmem:[%s6342_s8 + $0x30] sm:$0xff]   ;;  %v2377_v40 = vrot.slane %v6087_v37, 3 }
  0x17   : > { %5420 = vmatmul.mubr.msk.bf16.vlgmr.msra.gmra.mrb[0].mxu1 %vm469_vm0, %v6071_v13  ;;  %v2370_v25 = vsel %vm2363_vm1, %v2367_v18, %v2369_v22  ;;  %v2372_v30 = vsel %vm2363_vm1, %v2369_v22, %v2371_v27  ;;  %v2375_v36 = vrot.slane %v6084_v33, 3  ;;  %v6394_v43 = vld [vmem:[%s6342_s8 + $0x50] sm:$0xff]   ;;  %v6088_v48 = vld [vmem:[%s6342_s8 + $0x38] sm:$0xff]   ;;  %v6091_v49 = vld [vmem:[%s6342_s8 + $0x40] sm:$0xff]  }
  0x18   : > { %5580 = vmatmul.mubr.msk.bf16.vlgmr.msra.gmra.mrb[0].mxu0 %vm469_vm0, %v2368_v21  ;;  %5452 = vmatpush3.bf16.msra.mxu1 %v6072_v14  ;;  %v2374_v34 = vsel %vm2363_vm1, %v2371_v27, %v2373_v31  ;;  %v2379_v46 = vrot.slane %v6394_v43, 3  ;;  %v6092_v51 = vld [vmem:[%s6342_s8 + $0x14] sm:$0xff]   ;;  %v6093_v52 = vld [vmem:[%s6342_s8 + $0x48] sm:$0xff]   ;;  %v6095_v54 = vld [vmem:[%s6342_s8 + $0x1c] sm:$0xff]  }
  0x19   : > { %5612 = vmatpush3.bf16.msra.mxu0 %v6074_v17  ;;  %5423 = vmatprep.mubr.msk.bf16.mxu1 %vm469_vm0, %v6075_v19  ;;  %v2376_v42 = vsel %vm2363_vm1, %v2373_v31, %v2375_v36  ;;  %v2378_v44 = vsel %vm2363_vm1, %v2375_v36, %v2377_v40  ;;  %v6097_v55 = vld [vmem:[%s6342_s8 + $0x50] sm:$0xff]   ;;  %v6098_v56 = vld [vmem:[%s6342_s8 + $0x24] sm:$0xff]   ;;  %v6099_v58 = vld [vmem:[%s6342_s8 + $0x58] sm:$0xff]  }
  0x1a   : > { %5583 = vmatprep.mubr.msk.bf16.mxu0 %vm469_vm0, %v2370_v25  ;;  %5613 = vmatprep.subr.bf16.mxu0 %v6079_v24  ;;  %v2380_v50 = vsel %vm2363_vm1, %v2377_v40, %v2379_v46  ;;  %v6100_v59 = vld [vmem:[%s6342_s8 + $0x2c] sm:$0xff]   ;;  %v6101_v60 = vld [vmem:[%s6342_s8 + $0x60] sm:$0xff]   ;;  %v6102_v61 = vld [vmem:[%s6342_s8 + $0x34] sm:$0xff]  }
  0x1b   : > { %5453 = vmatprep.subr.bf16.mxu1 %v6083_v32  ;;  %v6103_v0 = vld [vmem:[%s6342_s8 + $0x68] sm:$0xff]   ;;  %v6105_v1 = vld [vmem:[%s6342_s8 + $0x3c] sm:$0xff]   ;;  %v6107_v2 = vld [vmem:[%s6342_s8 + $0x70] sm:$0xff]  }
  0x1c   : > { %5454 = vmatpush3.bf16.msra.mxu1 %v6083_v32  ;;  %v6108_v3 = vld [vmem:[%s6342_s8 + $0x44] sm:$0xff]   ;;  %v6127_v8 = vld [vmem:[%s6950_s1 + $0xd8] sm:$0xff]   ;;  %v6110_v10 = vld [vmem:[%s6342_s8 + $0x4c] sm:$0xff]  }
  0x1d   : > { %5614 = vmatpush3.bf16.msra.mxu0 %v6079_v24  ;;  %5455 = vmatprep.subr.bf16.mxu1 %v6094_v45  ;;  %v6111_v4 = vld [vmem:[%s6342_s8] sm:$0xfe]   ;;  %v6112_v5 = vld [vmem:[%s6342_s8 + $0x8] sm:$0xff]   ;;  %v6109_v9 = vld [vmem:[%s6342_s8 + $0x78] sm:$0xff]  }
  0x1e   : > { %5615 = vmatprep.subr.bf16.mxu0 %v6085_v35  ;;  %v901_v6 = vrot.slane %v6111_v4, 1  ;;  %v902_v7 = vrot.slane %v6112_v5, 1  ;;  %v6114_v11 = vld [vmem:[%s6342_s8 + $0x10] sm:$0xff]   ;;  %v6118_v14 = vld [vmem:[%s6342_s8 + $0x18] sm:$0xff]   ;;  %v6119_v18 = vld [vmem:[%s6342_s8 + $0x64] sm:$0xff]  }
  0x1f   : > { %5424 = vmatmul.mubr.msk.bf16.gmra.mrb[4].mxu1 %vm469_vm0, %v6077_v26  ;;  %v6113_v13 = vld [vmem:[%s6342_s8 + $0x54] sm:$0xff]   ;;  %v904_v15 = vrot.slane %v6114_v11, 1  ;;  %v6116_v16 = vld [vmem:[%s6342_s8 + $0x5c] sm:$0xff]   ;;  %v906_v17 = vrot.slane %v6118_v14, 1  ;;  %v6122_v22 = vld [vmem:[%s6342_s8 + $0x28] sm:$0xff]  }
  0x20   : > { %5584 = vmatmul.mubr.msk.bf16.gmra.mrb[4].mxu0 %vm469_vm0, %v2372_v30  ;;  %5427 = vmatprep.mubr.msk.bf16.mxu1 %vm469_vm0, %v6080_v29  ;;  %v903_v12 = vsel %vm900_vm2, %v901_v6, %v902_v7  ;;  %v6474_v19 = vld [vmem:[%s6950_s1 + $0xe0] sm:$0xff]   ;;  %v6125_v24 = vld [vmem:[%s6950_s1 + $0x48] sm:$0xff]   ;;  %v910_v26 = vrot.slane %v6122_v22, 1  ;;  %v6135_v27 = vld [vmem:[%s6950_s1 + $0x50] sm:$0xff]  }
  0x21   : > { %5587 = vmatprep.mubr.msk.bf16.mxu0 %vm469_vm0, %v2374_v34  ;;  %5616 = vmatpush3.bf16.msra.mxu0 %v6085_v35  ;;  %v905_v20 = vsel %vm900_vm2, %v902_v7, %v904_v15  ;;  %v6120_v21 = vld [vmem:[%s6342_s8 + $0x20] sm:$0xff]   ;;  %v907_v23 = vsel %vm900_vm2, %v904_v15, %v906_v17  ;;  %v6121_v28 = vld [vmem:[%s6342_s8 + $0x6c] sm:$0xff]   ;;  %v6123_v29 = vld [vmem:[%s6342_s8 + $0x74] sm:$0xff]  }
  0x22   : > { %5617 = vmatprep.subr.bf16.mxu0 %v6090_v41  ;;  %5456 = vmatpush3.bf16.msra.mxu1 %v6094_v45  ;;  %v908_v25 = vrot.slane %v6120_v21, 1  ;;  %v6124_v31 = vld [vmem:[%s6342_s8 + $0x30] sm:$0xff]   ;;  %v6128_v33 = vld [vmem:[%s6342_s8 + $0x38] sm:$0xff]  }
  0x23   : > { %5457 = vmatprep.subr.bf16.mxu1 %v6104_v53  ;;  %v6145_v34 = vld [vmem:[%s6950_s1 + $0x58] sm:$0xff]   ;;  %v912_v35 = vrot.slane %v6124_v31, 1  ;;  %v914_v36 = vrot.slane %v6128_v33, 1  ;;  %v6144_v5 = vld [vmem:[%s6342_s8 + $0x70] sm:$0xff]   ;;  %v6161_v33 = vld [vmem:[%s6342_s8 + $0x20] sm:$0xff]  }
  0x24   : > { %v909_v30 = vsel %vm900_vm2, %v906_v17, %v908_v25  ;;  %v911_v32 = vsel %vm900_vm2, %v908_v25, %v910_v26  ;;  %v6126_v37 = vld [vmem:[%s6342_s8 + $0x7c] sm:$0xff]   ;;  %v6146_v11 = vld [vmem:[%s6342_s8 + $0x4c] sm:$0xff]   ;;  %v6149_v14 = vld [vmem:[%s6342_s8 + $0x54] sm:$0xff]  }
  0x25   : > { %5618 = vmatpush3.bf16.msra.mxu0 %v6090_v41  ;;  %v913_v40 = vsel %vm900_vm2, %v910_v26, %v912_v35  ;;  %v6132_v41 = vld [vmem:[%s6342_s8 + $0x48] sm:$0xff]   ;;  %v6148_v7 = vld [vmem:[%s6342_s8 + $0x78] sm:$0xff]  }
  0x26   : > { %5651 = vmatprep.subr.bf16.mxu0 %v6096_v47  ;;  %5458 = vmatpush3.bf16.msra.mxu1 %v6104_v53  ;;  %v6138_v53 = vld [vmem:[%s6342_s8 + $0x58] sm:$0xff]   ;;  %v6154_v26 = vld [vmem:[%s6342_s8 + $0x64] sm:$0xff]  }
  0x27   : > { %5428 = vmatmul.mubr.msk.bf16.gmra.mrb[8].mxu1 %vm469_vm0, %v6082_v38  ;;  %5491 = vmatprep.subr.bf16.mxu1 %v6115_v62  ;;  %v6129_v38 = vld [vmem:[%s6342_s8 + $0x84] sm:$0xff]   ;;  %v6151_v22 = vld [vmem:[%s6342_s8 + $0x5c] sm:$0xff]   ;;  %v6160_v31 = vld [vmem:[%s6342_s8 + $0x74] sm:$0xff]  }
  0x28   : > { %5588 = vmatmul.mubr.msk.bf16.gmra.mrb[8].mxu0 %vm469_vm0, %v2376_v42  ;;  %5431 = vmatprep.mubr.msk.bf16.mxu1 %vm469_vm0, %v6086_v39  ;;  %v6130_v39 = vld [vmem:[%s6342_s8 + $0x40] sm:$0xff]   ;;  %v915_v42 = vsel %vm900_vm2, %v912_v35, %v914_v36 }
  0x29   : > { %5591 = vmatprep.mubr.msk.bf16.mxu0 %vm469_vm0, %v2378_v44  ;;  %v6513_v44 = vld [vmem:[%s6950_s1 + $0x60] sm:$0xff]   ;;  %v916_v45 = vrot.slane %v6130_v39, 1  ;;  %v6177_v39 = vld [vmem:[%s6950_s1 + $0x70] sm:$0xff]  }
  0x2f   : > { %5432 = vmatmul.mubr.msk.bf16.gmra.mrb[12].mxu1 %vm469_vm0, %v6088_v48  ;;  %v6131_v48 = vld [vmem:[%s6342_s8 + $0x8c] sm:$0xff]  }
  0x30   : > { %5592 = vmatmul.mubr.msk.bf16.gmra.mrb[12].mxu0 %vm469_vm0, %v2380_v50  ;;  %5435 = vmatprep.mubr.msk.bf16.mxu1 %vm469_vm0, %v6091_v49  ;;  %v6133_v49 = vld [vmem:[%s6342_s8 + $0x24] sm:$0xff]   ;;  %v917_v50 = vsel %vm900_vm2, %v914_v36, %v916_v45 }
  0x31   : > { %5619 = vmatprep.mubr.msk.bf16.mxu0 %vm469_vm0, %v6092_v51  ;;  %v6134_v51 = vld [vmem:[%s6342_s8 + $0x50] sm:$0xff]   ;;  %v6166_v36 = vld [vmem:[%s6950_s1 + $0x68] sm:$0xff]  }
  0x37   : > { %5436 = vmatmul.mubr.msk.bf16.gmra.mrb[16].mxu1 %vm469_vm0, %v6093_v52 }
  0x38   : > { %5620 = vmatmul.mubr.msk.bf16.vlgmr.msra.gmra.mrb[0].mxu0 %vm469_vm0, %v6095_v54  ;;  %5439 = vmatprep.mubr.msk.bf16.mxu1 %vm469_vm0, %v6097_v55  ;;  %v920_v54 = vrot.slane %v6134_v51, 1  ;;  %v922_v55 = vrot.slane %v6138_v53, 1  ;;  %v6167_v51 = vld [vmem:[%s6342_s8 + $0x8c] sm:$0xff]   ;;  %v6171_v53 = vld [vmem:[%s6342_s8 + $0x40] sm:$0xff]  }
  0x39   : > { %5652 = vmatpush3.bf16.msra.mxu0 %v6096_v47  ;;  %5623 = vmatprep.mubr.msk.bf16.mxu0 %vm469_vm0, %v6098_v56  ;;  %v918_v47 = vrot.slane %v6132_v41, 1  ;;  %v6136_v56 = vld [vmem:[%s6342_s8 + $0x2c] sm:$0xff]   ;;  %v6164_v41 = vld [vmem:[%s6342_s8 + $0x84] sm:$0xff]  }
  0x3a   : > { %5653 = vmatprep.subr.bf16.mxu0 %v6106_v57 }
  0x3b   : > { %v919_v52 = vsel %vm900_vm2, %v916_v45, %v918_v47  ;;  %v6165_v45 = vld [vmem:[%s6342_s8 + $0x30] sm:$0xff]  }
  0x3d   : > { %5654 = vmatpush3.bf16.msra.mxu0 %v6106_v57  ;;  %v6139_v57 = vld [vmem:[%s6342_s8 + $0x34] sm:$0xff]  }
  0x3e   : > { %5655 = vmatprep.subr.bf16.mxu0 %v6117_v63 }
  0x3f   : > { %5440 = vmatmul.mubr.msk.bf16.gmra.mrb[20].mxu1 %vm469_vm0, %v6099_v58  ;;  %v921_v58 = vsel %vm900_vm2, %v918_v47, %v920_v54  ;;  %v6169_v47 = vld [vmem:[%s6342_s8 + $0x38] sm:$0xff]  }
  0x40   : > { %5624 = vmatmul.mubr.msk.bf16.gmra.mrb[4].mxu0 %vm469_vm0, %v6100_v59  ;;  %5443 = vmatprep.mubr.msk.bf16.mxu1 %vm469_vm0, %v6101_v60  ;;  %v6140_v59 = vld [vmem:[%s6342_s8 + $0x60] sm:$0xff]   ;;  %v923_v60 = vsel %vm900_vm2, %v920_v54, %v922_v55 }
  0x41   : > { %5627 = vmatprep.mubr.msk.bf16.mxu0 %vm469_vm0, %v6102_v61  ;;  %5656 = vmatpush3.bf16.msra.mxu0 %v6117_v63  ;;  %v6142_v61 = vld [vmem:[%s6342_s8 + $0x68] sm:$0xff]   ;;  %v924_v63 = vrot.slane %v6140_v59, 1  ;;  %v6628_v59 = vld [vmem:[%s6950_s1 + $0x80] sm:$0xff]  }
  0x42   : > { %5657 = vmatprep.subr.bf16.mxu0 %v6127_v8 }
  0x43   : > { %v925_v4 = vsel %vm900_vm2, %v922_v55, %v924_v63  ;;  %v6173_v55 = vld [vmem:[%s6342_s8 + $0x48] sm:$0xff]  }
  0x45   : > { %5658 = vmatpush3.bf16.msra.mxu0 %v6127_v8  ;;  %v6168_v8 = vld [vmem:[%s6950_s1 + $0xf8] sm:$0xff]  }
  0x46   : > { %5691 = vmatprep.subr.bf16.mxu0 %v6474_v19 }
  0x47   : > { %5444 = vmatmul.mubr.msk.bf16.gmra.mrb[24].mxu1 %vm469_vm0, %v6103_v0  ;;  %v926_v0 = vrot.slane %v6142_v61, 1  ;;  %v1406_v61 = vrot.slane %v6173_v55, 2 }
  0x48   : > { %5628 = vmatmul.mubr.msk.bf16.gmra.mrb[8].mxu0 %vm469_vm0, %v6105_v1  ;;  %5447 = vmatprep.mubr.msk.bf16.mxu1 %vm469_vm0, %v6107_v2  ;;  %v6141_v1 = vld [vmem:[%s6342_s8 + $0x3c] sm:$0xff]   ;;  %v6158_v2 = vld [vmem:[%s6950_s1 + $0xf0] sm:$0xff]  }
  0x49   : > { %5631 = vmatprep.mubr.msk.bf16.mxu0 %vm469_vm0, %v6108_v3  ;;  %v6143_v3 = vld [vmem:[%s6342_s8 + $0x44] sm:$0xff]   ;;  %v927_v6 = vsel %vm900_vm2, %v924_v63, %v926_v0 }
  0x4f   : > { %5448 = vmatmul.mubr.msk.bf16.gmra.mrb[28].mxu1 %vm469_vm0, %v6109_v9  ;;  %v928_v9 = vrot.slane %v6144_v5, 1  ;;  %v6180_v5 = vld [vmem:[%s6342_s8 + $0x58] sm:$0xff]  }
  0x50   : > { %5632 = vmatmul.mubr.msk.bf16.gmra.mrb[12].mxu0 %vm469_vm0, %v6110_v10  ;;  %5459 = vmatprep.mubr.msk.bf16.mxu1 %vm469_vm0, %v903_v12  ;;  %v930_v10 = vrot.slane %v6148_v7, 1  ;;  %v6150_v12 = vld [vmem:[%s6342_s8 + $0x80] ss:$0 sps:$4 sm:$0x11]  }
  0x51   : > { %5635 = vmatprep.mubr.msk.bf16.mxu0 %vm469_vm0, %v6113_v13  ;;  %v6565_v13 = vld [vmem:[%s6950_s1 + $0x100] sm:$0xff]   ;;  %v929_v15 = vsel %vm900_vm2, %v926_v0, %v928_v9 }
  0x52   : > { %v931_v17 = vsel %vm900_vm2, %v928_v9, %v930_v10  ;;  %v6181_v7 = vld [vmem:[%s6342_s8 + $0x3c] sm:$0xff]  }
  0x57   : > { %5460 = vmatmul.mubr.msk.bf16.vlgmr.msra.gmra.mrb[0].mxu1 %vm469_vm0, %v905_v20 }
  0x58   : > { %5636 = vmatmul.mubr.msk.bf16.gmra.mrb[16].mxu0 %vm469_vm0, %v6116_v16  ;;  %5492 = vmatpush3.bf16.msra.mxu1 %v6115_v62  ;;  %v6147_v62 = vld [vmem:[%s6950_s1 + $0xe8] sm:$0xff]  }
  0x59   : > { %5463 = vmatprep.mubr.msk.bf16.mxu1 %vm469_vm0, %v907_v23  ;;  %5639 = vmatprep.mubr.msk.bf16.mxu0 %vm469_vm0, %v6119_v18  ;;  %v6153_v16 = vld [vmem:[%s6342_s8 + $0x8] sm:$0xff]   ;;  %v6152_v18 = vld [vmem:[%s6342_s8] sm:$0xfc]  }
  0x5a   : > { %5493 = vmatprep.subr.bf16.mxu1 %v6125_v24  ;;  %v1389_v20 = vrot.slane %v6152_v18, 2  ;;  %v1390_v21 = vrot.slane %v6153_v16, 2  ;;  %v6184_v16 = vld [vmem:[%s6342_s8 + $0x68] sm:$0xff]  }
  0x5c   : > { %5494 = vmatpush3.bf16.msra.mxu1 %v6125_v24  ;;  %v6155_v24 = vld [vmem:[%s6342_s8 + $0x10] sm:$0xff]   ;;  %v1391_v25 = vsel %vm1388_vm3, %v1389_v20, %v1390_v21 }
  0x5d   : > { %5495 = vmatprep.subr.bf16.mxu1 %v6135_v27 }
  0x5f   : > { %5464 = vmatmul.mubr.msk.bf16.gmra.mrb[4].mxu1 %vm469_vm0, %v909_v30 }
  0x60   : > { %5640 = vmatmul.mubr.msk.bf16.gmra.mrb[20].mxu0 %vm469_vm0, %v6121_v28  ;;  %5467 = vmatprep.mubr.msk.bf16.mxu1 %vm469_vm0, %v911_v32  ;;  %v1392_v28 = vrot.slane %v6155_v24, 2  ;;  %v1414_v24 = vrot.slane %v6184_v16, 2 }
  0x61   : > { %5643 = vmatprep.mubr.msk.bf16.mxu0 %vm469_vm0, %v6123_v29  ;;  %5496 = vmatpush3.bf16.msra.mxu1 %v6135_v27  ;;  %v6159_v27 = vld [vmem:[%s6342_s8 + $0x18] sm:$0xff]   ;;  %v6157_v29 = vld [vmem:[%s6342_s8 + $0x6c] sm:$0xff]  }
  0x62   : > { %5497 = vmatprep.subr.bf16.mxu1 %v6145_v34  ;;  %v1394_v30 = vrot.slane %v6159_v27, 2  ;;  %v1393_v32 = vsel %vm1388_vm3, %v1390_v21, %v1392_v28  ;;  %v6189_v21 = vld [vmem:[%s6950_s1 + $0x108] sm:$0xff]   ;;  %v6186_v27 = vld [vmem:[%s6342_s8 + $0x70] sm:$0xff]  }
  0x64   : > { %v1395_v35 = vsel %vm1388_vm3, %v1392_v28, %v1394_v30 }
  0x65   : > { %5498 = vmatpush3.bf16.msra.mxu1 %v6145_v34  ;;  %v6163_v34 = vld [vmem:[%s6342_s8 + $0x28] sm:$0xff]  }
  0x66   : > { %5531 = vmatprep.subr.bf16.mxu1 %v6513_v44 }
  0x67   : > { %5468 = vmatmul.mubr.msk.bf16.gmra.mrb[8].mxu1 %vm469_vm0, %v913_v40  ;;  %v6162_v40 = vld [vmem:[%s6342_s8 + $0x7c] sm:$0xff]  }
  0x68   : > { %5644 = vmatmul.mubr.msk.bf16.gmra.mrb[24].mxu0 %vm469_vm0, %v6126_v37  ;;  %5471 = vmatprep.mubr.msk.bf16.mxu1 %vm469_vm0, %v915_v42  ;;  %v1396_v37 = vrot.slane %v6161_v33, 2  ;;  %v6191_v33 = vld [vmem:[%s6342_s8 + $0x5c] sm:$0xff]  }
  0x69   : > { %5647 = vmatprep.mubr.msk.bf16.mxu0 %vm469_vm0, %v6129_v38  ;;  %v1398_v38 = vrot.slane %v6163_v34, 2  ;;  %v6208_v34 = vld [vmem:[%s6950_s1 + $0x118] sm:$0xff]  }
  0x6a   : > { %v1397_v42 = vsel %vm1388_vm3, %v1394_v30, %v1396_v37 }
  0x6f   : > { %5472 = vmatmul.mubr.msk.bf16.gmra.mrb[12].mxu1 %vm469_vm0, %v917_v50  ;;  %v1402_v50 = vrot.slane %v6169_v47, 2  ;;  %v6195_v47 = vld [vmem:[%s6342_s8 + $0x18] sm:$0xff]  }
  0x70   : > { %5648 = vmatmul.mubr.msk.bf16.gmra.mrb[28].mxu0 %vm469_vm0, %v6131_v48  ;;  %5475 = vmatprep.mubr.msk.bf16.mxu1 %vm469_vm0, %v919_v52  ;;  %v6187_v48 = vld [vmem:[%s6950_s1 + $0x78] sm:$0xff]  }
  0x71   : > { %5659 = vmatprep.mubr.msk.bf16.mxu0 %vm469_vm0, %v6133_v49  ;;  %v1400_v49 = vrot.slane %v6165_v45, 2  ;;  %v6170_v52 = vld [vmem:[%s6342_s8 + $0x94] sm:$0xff]   ;;  %v6193_v45 = vld [vmem:[%s6342_s8 + $0x64] sm:$0xff]  }
  0x73   : > { %v1401_v54 = vsel %vm1388_vm3, %v1398_v38, %v1400_v49 }
  0x77   : > { %5476 = vmatmul.mubr.msk.bf16.gmra.mrb[16].mxu1 %vm469_vm0, %v921_v58  ;;  %v6175_v58 = vld [vmem:[%s6342_s8 + $0x2c] sm:$0xff]  }
  0x78   : > { %5660 = vmatmul.mubr.msk.bf16.vlgmr.msra.gmra.mrb[0].mxu0 %vm469_vm0, %v6136_v56  ;;  %5479 = vmatprep.mubr.msk.bf16.mxu1 %vm469_vm0, %v923_v60  ;;  %v1403_v56 = vsel %vm1388_vm3, %v1400_v49, %v1402_v50  ;;  %v1404_v60 = vrot.slane %v6171_v53, 2  ;;  %v3752_v0 = vrot.slane %v6175_v58, 1  ;;  %v6196_v49 = vld [vmem:[%s6342_s8 + $0x6c] sm:$0xff]   ;;  %v1877_v53 = vrot.slane %v6195_v47, 2  ;;  %v6216_v47 = vld [vmem:[%s6342_s8 + $0x60] sm:$0xff]  }
  0x79   : > { %5692 = vmatpush3.bf16.msra.mxu0 %v6474_v19  ;;  %5663 = vmatprep.mubr.msk.bf16.mxu0 %vm469_vm0, %v6139_v57  ;;  %v932_v19 = vrot.slane %v6150_v12, 1  ;;  %v6174_v57 = vld [vmem:[%s6342_s8 + $0x24] sm:$0xfe]  }
  0x7a   : > { %5693 = vmatprep.subr.bf16.mxu0 %v6147_v62  ;;  %v3751_v63 = vrot.slane %v6174_v57, 1  ;;  %v6182_v12 = vld [vmem:[%s6342_s8 + $0x60] sm:$0xff]  }
  0x7b   : > { %v933_v23 = vsel %vm900_vm2, %v930_v10, %v932_v19  ;;  %v1410_v10 = vrot.slane %v6180_v5, 2  ;;  %v6185_v19 = vld [vmem:[%s6342_s8 + $0x4c] sm:$0xff]  }
  0x7c   : > { %v6202_v5 = vld [vmem:[%s6342_s8 + $0x30] sm:$0xff]  }
  0x7d   : > { %5694 = vmatpush3.bf16.msra.mxu0 %v6147_v62  ;;  %v6172_v62 = vld [vmem:[%s6342_s8 + $0x9c] sm:$0xff]  }
  0x7e   : > { %5695 = vmatprep.subr.bf16.mxu0 %v6158_v2 }
  0x7f   : > { %5480 = vmatmul.mubr.msk.bf16.gmra.mrb[20].mxu1 %vm469_vm0, %v925_v4  ;;  %v1407_v4 = vsel %vm1388_vm3, %v1404_v60, %v1406_v61 }
  0x80   : > { %5664 = vmatmul.mubr.msk.bf16.gmra.mrb[4].mxu0 %vm469_vm0, %v6141_v1  ;;  %5483 = vmatprep.mubr.msk.bf16.mxu1 %vm469_vm0, %v927_v6  ;;  %v6176_v1 = vld [vmem:[%s6342_s8 + $0x50] sm:$0xff]   ;;  %v3753_v6 = vsel %vm900_vm2, %v3751_v63, %v3752_v0  ;;  %v6201_v63 = vld [vmem:[%s6342_s8 + $0x7c] sm:$0xff]  }
  0x81   : > { %5667 = vmatprep.mubr.msk.bf16.mxu0 %vm469_vm0, %v6143_v3  ;;  %5696 = vmatpush3.bf16.msra.mxu0 %v6158_v2  ;;  %v1405_v2 = vsel %vm1388_vm3, %v1402_v50, %v1404_v60  ;;  %v6178_v3 = vld [vmem:[%s6342_s8 + $0x34] sm:$0xff]  }
  0x82   : > { %5697 = vmatprep.subr.bf16.mxu0 %v6168_v8  ;;  %v3754_v9 = vrot.slane %v6178_v3, 1  ;;  %v6198_v60 = vld [vmem:[%s6342_s8 + $0x74] sm:$0xff]   ;;  %v3772_v3 = vrot.slane %v6201_v63, 1  ;;  %v6221_v63 = vld [vmem:[%s6342_s8 + $0x44] sm:$0xff]  }
  0x85   : > { %5698 = vmatpush3.bf16.msra.mxu0 %v6168_v8  ;;  %v1408_v8 = vrot.slane %v6176_v1, 2  ;;  %v3770_v1 = vrot.slane %v6198_v60, 1  ;;  %v6220_v60 = vld [vmem:[%s6342_s8 + $0x70] sm:$0xff]  }
  0x86   : > { %5731 = vmatprep.subr.bf16.mxu0 %v6565_v13 }
  0x87   : > { %5484 = vmatmul.mubr.msk.bf16.gmra.mrb[24].mxu1 %vm469_vm0, %v929_v15  ;;  %v1409_v15 = vsel %vm1388_vm3, %v1406_v61, %v1408_v8  ;;  %v1411_v18 = vsel %vm1388_vm3, %v1408_v8, %v1410_v10  ;;  %v6204_v8 = vld [vmem:[%s6342_s8 + $0x38] sm:$0xff]  }
  0x88   : > { %5668 = vmatmul.mubr.msk.bf16.gmra.mrb[8].mxu0 %vm469_vm0, %v6146_v11  ;;  %5487 = vmatprep.mubr.msk.bf16.mxu1 %vm469_vm0, %v931_v17  ;;  %v3756_v11 = vrot.slane %v6181_v7, 1  ;;  %v3755_v17 = vsel %vm900_vm2, %v3752_v0, %v3754_v9  ;;  %v6203_v7 = vld [vmem:[%s6342_s8 + $0x84] sm:$0xff]  }
  0x89   : > { %5671 = vmatprep.mubr.msk.bf16.mxu0 %vm469_vm0, %v6149_v14  ;;  %v6183_v14 = vld [vmem:[%s6342_s8 + $0x44] sm:$0xff]  }
  0x8a   : > { %v3757_v20 = vsel %vm900_vm2, %v3754_v9, %v3756_v11 }
  0x8f   : > { %5488 = vmatmul.mubr.msk.bf16.gmra.mrb[28].mxu1 %vm469_vm0, %v933_v23  ;;  %v3758_v23 = vrot.slane %v6183_v14, 1  ;;  %v3774_v14 = vrot.slane %v6203_v7, 1 }
  0x90   : > { %5672 = vmatmul.mubr.msk.bf16.gmra.mrb[12].mxu0 %vm469_vm0, %v6151_v22  ;;  %5499 = vmatprep.mubr.msk.bf16.mxu1 %vm469_vm0, %v1391_v25  ;;  %v1412_v22 = vrot.slane %v6182_v12, 2  ;;  %v3760_v25 = vrot.slane %v6185_v19, 1  ;;  %v1883_v12 = vrot.slane %v6202_v5, 2  ;;  %v6206_v19 = vld [vmem:[%s6342_s8 + $0x40] sm:$0xff]  }
  0x91   : > { %5675 = vmatprep.mubr.msk.bf16.mxu0 %vm469_vm0, %v6154_v26  ;;  %v6199_v26 = vld [vmem:[%s6950_s1 + $0x110] sm:$0xff]   ;;  %v3759_v30 = vsel %vm900_vm2, %v3756_v11, %v3758_v23 }
  0x92   : > { %v1413_v28 = vsel %vm1388_vm3, %v1410_v10, %v1412_v22  ;;  %v3773_v10 = vsel %vm900_vm2, %v3770_v1, %v3772_v3  ;;  %v6205_v11 = vld [vmem:[%s6342_s8 + $0x8c] sm:$0xff]  }
  0x93   : > { %v3776_v16 = vrot.slane %v6205_v11, 1  ;;  %v6225_v11 = vld [vmem:[%s6342_s8 + $0x54] sm:$0xff]  }
  0x97   : > { %5500 = vmatmul.mubr.msk.bf16.vlgmr.msra.gmra.mrb[0].mxu1 %vm469_vm0, %v1393_v32  ;;  %v3761_v32 = vsel %vm900_vm2, %v3758_v23, %v3760_v25  ;;  %v6248_v23 = vld [vmem:[%s6950_s1 + $0x90] sm:$0xff]  }
  0x98   : > { %5676 = vmatmul.mubr.msk.bf16.gmra.mrb[16].mxu0 %vm469_vm0, %v6157_v29  ;;  %5532 = vmatpush3.bf16.msra.mxu1 %v6513_v44  ;;  %v1399_v44 = vsel %vm1388_vm3, %v1396_v37, %v1398_v38  ;;  %v6188_v29 = vld [vmem:[%s6342_s8 + $0x54] sm:$0xff]   ;;  %v3764_v38 = vrot.slane %v6191_v33, 1 }
  0x99   : > { %5503 = vmatprep.mubr.msk.bf16.mxu1 %vm469_vm0, %v1395_v35  ;;  %5679 = vmatprep.mubr.msk.bf16.mxu0 %vm469_vm0, %v6160_v31  ;;  %v1415_v31 = vsel %vm1388_vm3, %v1412_v22, %v1414_v24  ;;  %v1416_v35 = vrot.slane %v6186_v27, 2  ;;  %v6209_v22 = vld [vmem:[%s6342_s8 + $0x48] sm:$0xff]  }
  0x9a   : > { %5533 = vmatprep.subr.bf16.mxu1 %v6166_v36 }
  0x9c   : > { %5534 = vmatpush3.bf16.msra.mxu1 %v6166_v36  ;;  %v3762_v36 = vrot.slane %v6188_v29, 1 }
  0x9d   : > { %5535 = vmatprep.subr.bf16.mxu1 %v6177_v39 }
  0x9f   : > { %5504 = vmatmul.mubr.msk.bf16.gmra.mrb[4].mxu1 %vm469_vm0, %v1397_v42 }
  0xa0   : > { %5680 = vmatmul.mubr.msk.bf16.gmra.mrb[20].mxu0 %vm469_vm0, %v6162_v40  ;;  %5507 = vmatprep.mubr.msk.bf16.mxu1 %vm469_vm0, %v1399_v44  ;;  %v6192_v40 = vld [vmem:[%s6342_s8 + $0x80] ss:$0 sps:$4 sm:$0x33]   ;;  %v6194_v44 = vld [vmem:[%s6342_s8 + $0x10] sm:$0xfc]  }
  0xa1   : > { %5683 = vmatprep.mubr.msk.bf16.mxu0 %vm469_vm0, %v6164_v41  ;;  %5536 = vmatpush3.bf16.msra.mxu1 %v6177_v39  ;;  %v1417_v39 = vsel %vm1388_vm3, %v1414_v24, %v1416_v35  ;;  %v3763_v41 = vsel %vm900_vm2, %v3760_v25, %v3762_v36  ;;  %v1420_v50 = vrot.slane %v6192_v40, 2  ;;  %v3777_v24 = vsel %vm900_vm2, %v3774_v14, %v3776_v16  ;;  %v6210_v25 = vld [vmem:[%s6342_s8 + $0x9c] sm:$0xff]  }
  0xa2   : > { %5537 = vmatprep.subr.bf16.mxu1 %v6187_v48  ;;  %v3780_v29 = vrot.slane %v6210_v25, 1 }
  0xa5   : > { %5538 = vmatpush3.bf16.msra.mxu1 %v6187_v48  ;;  %v3765_v48 = vsel %vm900_vm2, %v3762_v36, %v3764_v38 }
  0xa6   : > { %5771 = vmatprep.subr.bf16.mxu1 %v6628_v59 }
  0xa7   : > { %5508 = vmatmul.mubr.msk.bf16.gmra.mrb[8].mxu1 %vm469_vm0, %v1401_v54  ;;  %v3768_v54 = vrot.slane %v6196_v49, 1 }
  0xa8   : > { %5684 = vmatmul.mubr.msk.bf16.gmra.mrb[24].mxu0 %vm469_vm0, %v6167_v51  ;;  %5511 = vmatprep.mubr.msk.bf16.mxu1 %vm469_vm0, %v1403_v56  ;;  %v3766_v51 = vrot.slane %v6193_v45, 1  ;;  %v6197_v56 = vld [vmem:[%s6342_s8 + $0x20] sm:$0xff]  }
  0xa9   : > { %5687 = vmatprep.mubr.msk.bf16.mxu0 %vm469_vm0, %v6170_v52  ;;  %v1876_v52 = vrot.slane %v6194_v44, 2  ;;  %v1879_v0 = vrot.slane %v6197_v56, 2 }
  0xaa   : > { %v3767_v57 = vsel %vm900_vm2, %v3764_v38, %v3766_v51  ;;  %v3769_v61 = vsel %vm900_vm2, %v3766_v51, %v3768_v54  ;;  %v6215_v38 = vld [vmem:[%s6342_s8 + $0x2c] sm:$0xff]  }
  0xab   : > { %v1878_v58 = vsel %vm1388_vm3, %v1876_v52, %v1877_v53  ;;  %v4239_v45 = vrot.slane %v6215_v38, 2  ;;  %v6218_v51 = vld [vmem:[%s6342_s8 + $0x68] sm:$0xff]  }
  0xac   : > { %v1897_v56 = vrot.slane %v6218_v51, 2 }
  0xaf   : > { %5512 = vmatmul.mubr.msk.bf16.gmra.mrb[12].mxu1 %vm469_vm0, %v1405_v2 }
  0xb0   : > { %5688 = vmatmul.mubr.msk.bf16.gmra.mrb[28].mxu0 %vm469_vm0, %v6172_v62  ;;  %5515 = vmatprep.mubr.msk.bf16.mxu1 %vm469_vm0, %v1407_v4  ;;  %v6200_v62 = vld [vmem:[%s6342_s8 + $0x28] sm:$0xff]   ;;  %v1880_v4 = vsel %vm1388_vm3, %v1877_v53, %v1879_v0  ;;  %v6219_v53 = vld [vmem:[%s6342_s8 + $0x3c] sm:$0xff]  }
  0xb1   : > { %5699 = vmatprep.mubr.msk.bf16.mxu0 %vm469_vm0, %v3753_v6  ;;  %v1881_v2 = vrot.slane %v6200_v62, 2  ;;  %v3771_v6 = vsel %vm900_vm2, %v3768_v54, %v3770_v1  ;;  %v1895_v54 = vrot.slane %v6216_v47, 2  ;;  %v6238_v47 = vld [vmem:[%s6342_s8 + $0x78] sm:$0xff]  }
  0xb3   : > { %v1882_v9 = vsel %vm1388_vm3, %v1879_v0, %v1881_v2  ;;  %v1898_v62 = vsel %vm1388_vm3, %v1895_v54, %v1897_v56  ;;  %v6222_v0 = vld [vmem:[%s6342_s8 + $0x78] sm:$0xff]  }
  0xb4   : > { %v1901_v5 = vrot.slane %v6222_v0, 2 }
  0xb7   : > { %5516 = vmatmul.mubr.msk.bf16.gmra.mrb[16].mxu1 %vm469_vm0, %v1409_v15  ;;  %v1885_v15 = vrot.slane %v6204_v8, 2  ;;  %v6224_v8 = vld [vmem:[%s6342_s8 + $0x80] sm:$0xff]  }
  0xb8   : > { %5700 = vmatmul.mubr.msk.bf16.vlgmr.msra.gmra.mrb[0].mxu0 %vm469_vm0, %v3755_v17  ;;  %5519 = vmatprep.mubr.msk.bf16.mxu1 %vm469_vm0, %v1411_v18  ;;  %v6247_v17 = vld [vmem:[%s6950_s1 + $0x88] sm:$0xff]   ;;  %v1884_v18 = vsel %vm1388_vm3, %v1881_v2, %v1883_v12 }
  0xb9   : > { %5732 = vmatpush3.bf16.msra.mxu0 %v6565_v13  ;;  %5703 = vmatprep.mubr.msk.bf16.mxu0 %vm469_vm0, %v3757_v20  ;;  %v6190_v13 = vld [vmem:[%s6342_s8 + $0x78] sm:$0xff]   ;;  %v1886_v20 = vsel %vm1388_vm3, %v1883_v12, %v1885_v15  ;;  %v6223_v2 = vld [vmem:[%s6342_s8 + $0x4c] sm:$0xff]  }
  0xba   : > { %5733 = vmatprep.subr.bf16.mxu0 %v6189_v21  ;;  %v1418_v37 = vrot.slane %v6190_v13, 2  ;;  %v6211_v13 = vld [vmem:[%s6342_s8 + $0x50] sm:$0xff]   ;;  %v6226_v12 = vld [vmem:[%s6342_s8 + $0x88] sm:$0xff]  }
  0xbc   : > { %v1419_v42 = vsel %vm1388_vm3, %v1416_v35, %v1418_v37  ;;  %v1421_v55 = vsel %vm1388_vm3, %v1418_v37, %v1420_v50  ;;  %v6213_v35 = vld [vmem:[%s6342_s8 + $0x58] sm:$0xff]   ;;  %v6214_v37 = vld [vmem:[%s6342_s8 + $0x24] sm:$0xfc]  }
  0xbd   : > { %5734 = vmatpush3.bf16.msra.mxu0 %v6189_v21  ;;  %v6207_v21 = vld [vmem:[%s6342_s8 + $0x94] sm:$0xff]  }
  0xbe   : > { %5735 = vmatprep.subr.bf16.mxu0 %v6199_v26  ;;  %v3778_v27 = vrot.slane %v6207_v21, 1  ;;  %v6217_v50 = vld [vmem:[%s6342_s8 + $0x34] sm:$0xff]  }
  0xbf   : > { %5520 = vmatmul.mubr.msk.bf16.gmra.mrb[20].mxu1 %vm469_vm0, %v1413_v28  ;;  %v1889_v28 = vrot.slane %v6209_v22, 2 }
  0xc0   : > { %5704 = vmatmul.mubr.msk.bf16.gmra.mrb[4].mxu0 %vm469_vm0, %v3759_v30  ;;  %5523 = vmatprep.mubr.msk.bf16.mxu1 %vm469_vm0, %v1415_v31  ;;  %v6249_v30 = vld [vmem:[%s6950_s1 + $0x98] sm:$0xff]   ;;  %v3781_v36 = vsel %vm900_vm2, %v3778_v27, %v3780_v29 }
  0xc1   : > { %5707 = vmatprep.mubr.msk.bf16.mxu0 %vm469_vm0, %v3761_v32  ;;  %5736 = vmatpush3.bf16.msra.mxu0 %v6199_v26  ;;  %v1887_v26 = vrot.slane %v6206_v19, 2  ;;  %v3779_v32 = vsel %vm900_vm2, %v3776_v16, %v3778_v27  ;;  %v1903_v16 = vrot.slane %v6224_v8, 2 }
  0xc2   : > { %5737 = vmatprep.subr.bf16.mxu0 %v6208_v34 }
  0xc3   : > { %v1888_v31 = vsel %vm1388_vm3, %v1885_v15, %v1887_v26  ;;  %v1890_v33 = vsel %vm1388_vm3, %v1887_v26, %v1889_v28  ;;  %v6227_v15 = vld [vmem:[%s6342_s8 + $0x5c] sm:$0xff]   ;;  %v6231_v26 = vld [vmem:[%s6342_s8 + $0x6c] sm:$0xff]  }
  0xc4   : > { %v4251_v19 = vrot.slane %v6227_v15, 2 }
  0xc5   : > { %5738 = vmatpush3.bf16.msra.mxu0 %v6208_v34  ;;  %v6212_v34 = vld [vmem:[%s6342_s8 + $0xa4] ss:$0 sps:$4 sm:$0x11]  }
  0xc6   : > { %v3782_v40 = vrot.slane %v6212_v34, 1  ;;  %v6233_v34 = vld [vmem:[%s6342_s8 + $0x74] sm:$0xff]  }
  0xc7   : > { %5524 = vmatmul.mubr.msk.bf16.gmra.mrb[24].mxu1 %vm469_vm0, %v1417_v39  ;;  %v1891_v39 = vrot.slane %v6211_v13, 2  ;;  %v6232_v13 = vld [vmem:[%s6342_s8 + $0x60] sm:$0xff]   ;;  %v4257_v43 = vrot.slane %v6233_v34, 2 }
  0xc8   : > { %5708 = vmatmul.mubr.msk.bf16.gmra.mrb[8].mxu0 %vm469_vm0, %v3763_v41  ;;  %5527 = vmatprep.mubr.msk.bf16.mxu1 %vm469_vm0, %v1419_v42  ;;  %v1893_v41 = vrot.slane %v6213_v35, 2  ;;  %v4238_v42 = vrot.slane %v6214_v37, 2  ;;  %v6234_v35 = vld [vmem:[%s6342_s8 + $0x68] sm:$0xff]   ;;  %v6235_v37 = vld [vmem:[%s6342_s8 + $0x7c] sm:$0xff]   ;;  %v2383_v38 = vrot.slane %v6232_v13, 3 }
  0xc9   : > { %5711 = vmatprep.mubr.msk.bf16.mxu0 %vm469_vm0, %v3765_v48  ;;  %v1892_v44 = vsel %vm1388_vm3, %v1889_v28, %v1891_v39  ;;  %v3783_v48 = vsel %vm900_vm2, %v3780_v29, %v3782_v40 }
  0xca   : > { %v1894_v49 = vsel %vm1388_vm3, %v1891_v39, %v1893_v41  ;;  %v4240_v52 = vsel %vm1388_vm3, %v4238_v42, %v4239_v45  ;;  %v2385_v39 = vrot.slane %v6234_v35, 3 }
  0xcf   : > { %5528 = vmatmul.mubr.msk.bf16.gmra.mrb[28].mxu1 %vm469_vm0, %v1421_v55  ;;  %v4241_v55 = vrot.slane %v6217_v50, 2 }
  0xd0   : > { %5712 = vmatmul.mubr.msk.bf16.gmra.mrb[12].mxu0 %vm469_vm0, %v3767_v57  ;;  %5539 = vmatprep.mubr.msk.bf16.mxu1 %vm469_vm0, %v1878_v58  ;;  %v4243_v57 = vrot.slane %v6219_v53, 2  ;;  %v1896_v58 = vsel %vm1388_vm3, %v1893_v41, %v1895_v54  ;;  %v6236_v41 = vld [vmem:[%s6342_s8 + $0x70] sm:$0xff]  }
  0xd1   : > { %5715 = vmatprep.mubr.msk.bf16.mxu0 %vm469_vm0, %v3769_v61  ;;  %v4242_v61 = vsel %vm1388_vm3, %v4239_v45, %v4241_v55  ;;  %v2386_v45 = vsel %vm2363_vm1, %v2383_v38, %v2385_v39  ;;  %v2387_v50 = vrot.slane %v6236_v41, 3 }
  0xd2   : > { %v4244_v1 = vsel %vm1388_vm3, %v4241_v55, %v4243_v57  ;;  %v6240_v55 = vld [vmem:[%s6342_s8 + $0x80] sm:$0xff]  }
  0xd3   : > { %v2388_v54 = vsel %vm2363_vm1, %v2385_v39, %v2387_v50 }
  0xd7   : > { %5540 = vmatmul.mubr.msk.bf16.vlgmr.msra.gmra.mrb[0].mxu1 %vm469_vm0, %v1880_v4  ;;  %v4245_v4 = vrot.slane %v6221_v63, 2  ;;  %v2391_v63 = vrot.slane %v6240_v55, 3 }
  0xd8   : > { %5716 = vmatmul.mubr.msk.bf16.gmra.mrb[16].mxu0 %vm469_vm0, %v3771_v6  ;;  %5775 = vmatpush3.bf16.msra.mxu1 %v6628_v59  ;;  %v3775_v59 = vsel %vm900_vm2, %v3772_v3, %v3774_v14  ;;  %v1899_v3 = vrot.slane %v6220_v60, 2  ;;  %v4247_v6 = vrot.slane %v6223_v2, 2  ;;  %v6242_v60 = vld [vmem:[%s6342_s8 + $0x88] sm:$0xff]  }
  0xd9   : > { %5543 = vmatprep.mubr.msk.bf16.mxu1 %vm469_vm0, %v1882_v9  ;;  %5719 = vmatprep.mubr.msk.bf16.mxu0 %vm469_vm0, %v3773_v10  ;;  %v4246_v9 = vsel %vm1388_vm3, %v4243_v57, %v4245_v4 }
  0xda   : > { %5772 = vmatprep.subr.bf16.mxu1 %v6247_v17  ;;  %v1900_v7 = vsel %vm1388_vm3, %v1897_v56, %v1899_v3  ;;  %v1902_v10 = vsel %vm1388_vm3, %v1899_v3, %v1901_v5  ;;  %v4248_v14 = vsel %vm1388_vm3, %v4245_v4, %v4247_v6  ;;  %v6244_v4 = vld [vmem:[%s6342_s8 + $0x90] ss:$0 sps:$4 sm:$0x77]  }
  0xdc   : > { %5776 = vmatpush3.bf16.msra.mxu1 %v6247_v17  ;;  %v4249_v17 = vrot.slane %v6225_v11, 2 }
  0xdd   : > { %5773 = vmatprep.subr.bf16.mxu1 %v6248_v23 }
  0xde   : > { %v4250_v21 = vsel %vm1388_vm3, %v4247_v6, %v4249_v17  ;;  %v4252_v25 = vsel %vm1388_vm3, %v4249_v17, %v4251_v19 }
  0xdf   : > { %5544 = vmatmul.mubr.msk.bf16.gmra.mrb[4].mxu1 %vm469_vm0, %v1884_v18  ;;  %v1905_v18 = vrot.slane %v6226_v12, 2 }
  0xe0   : > { %5720 = vmatmul.mubr.msk.bf16.gmra.mrb[20].mxu0 %vm469_vm0, %v3775_v59  ;;  %5547 = vmatprep.mubr.msk.bf16.mxu1 %vm469_vm0, %v1886_v20  ;;  %v1904_v59 = vsel %vm1388_vm3, %v1901_v5, %v1903_v16  ;;  %v6228_v20 = vld [vmem:[%s6342_s8 + $0x90] ss:$0 sps:$4 sm:$0x33]  }
  0xe1   : > { %5723 = vmatprep.mubr.msk.bf16.mxu0 %vm469_vm0, %v3777_v24  ;;  %5777 = vmatpush3.bf16.msra.mxu1 %v6248_v23  ;;  %v1906_v22 = vsel %vm1388_vm3, %v1903_v16, %v1905_v18  ;;  %v6229_v23 = vld [vmem:[%s6342_s8 + $0x64] sm:$0xff]   ;;  %v6230_v24 = vld [vmem:[%s6342_s8 + $0x58] sm:$0xff]   ;;  %v1907_v27 = vrot.slane %v6228_v20, 2 }
  0xe2   : > { %5774 = vmatprep.subr.bf16.mxu1 %v6249_v30  ;;  %v4253_v28 = vrot.slane %v6229_v23, 2  ;;  %v2381_v29 = vrot.slane %v6230_v24, 3 }
  0xe4   : > { %v2384_v40 = vsel %vm2363_vm1, %v2381_v29, %v2383_v38 }
  0xe5   : > { %5778 = vmatpush3.bf16.msra.mxu1 %v6249_v30  ;;  %v4255_v30 = vrot.slane %v6231_v26, 2 }
  0xe7   : > { %5548 = vmatmul.mubr.msk.bf16.gmra.mrb[8].mxu1 %vm469_vm0, %v1888_v31  ;;  %v1908_v31 = vsel %vm1388_vm3, %v1905_v18, %v1907_v27  ;;  %v4258_v42 = vsel %vm1388_vm3, %v4255_v30, %v4257_v43 }
  0xe8   : > { %5724 = vmatmul.mubr.msk.bf16.gmra.mrb[24].mxu0 %vm469_vm0, %v3779_v32  ;;  %5551 = vmatprep.mubr.msk.bf16.mxu1 %vm469_vm0, %v1890_v33  ;;  %v4254_v32 = vsel %vm1388_vm3, %v4251_v19, %v4253_v28  ;;  %v2382_v33 = vsel %vm2363_vm1, %v2379_v46, %v2381_v29  ;;  %v4259_v46 = vrot.slane %v6235_v37, 2 }
  0xe9   : > { %5727 = vmatprep.mubr.msk.bf16.mxu0 %vm469_vm0, %v3781_v36  ;;  %v4256_v36 = vsel %vm1388_vm3, %v4253_v28, %v4255_v30  ;;  %v6864_v30 = vld [vmem:[%s6951_s2] ss:$0 sm:$0xff] }
  0xef   : > { %5552 = vmatmul.mubr.msk.bf16.gmra.mrb[12].mxu1 %vm469_vm0, %v1892_v44  ;;  %v6237_v44 = vld [vmem:[%s6342_s8 + $0x84] sm:$0xff]  }
  0xf0   : > { %5728 = vmatmul.mubr.msk.bf16.gmra.mrb[28].mxu0 %vm469_vm0, %v3783_v48  ;;  %5555 = vmatprep.mubr.msk.bf16.mxu1 %vm469_vm0, %v1894_v49  ;;  %v4260_v48 = vsel %vm1388_vm3, %v4257_v43, %v4259_v46  ;;  %v6239_v49 = vld [vmem:[%s6342_s8 + $0x8c] sm:$0xff]   ;;  %v4261_v51 = vrot.slane %v6237_v44, 2 }
  0xf1   : > { %5739 = vmatprep.mubr.msk.bf16.mxu0 %vm469_vm0, %v4240_v52  ;;  %v2389_v52 = vrot.slane %v6238_v47, 3  ;;  %v4263_v53 = vrot.slane %v6239_v49, 2 }
  0xf2   : > { %v4262_v56 = vsel %vm1388_vm3, %v4259_v46, %v4261_v51 }
  0xf3   : > { %v2390_v57 = vsel %vm2363_vm1, %v2387_v50, %v2389_v52  ;;  %v2392_v3 = vsel %vm2363_vm1, %v2389_v52, %v2391_v63 }
  0xf7   : > { %5556 = vmatmul.mubr.msk.bf16.gmra.mrb[16].mxu1 %vm469_vm0, %v1896_v58  ;;  %v6241_v58 = vld [vmem:[%s6342_s8 + $0x94] sm:$0xff]  }
  0xf8   : > { %5740 = vmatmul.mubr.msk.bf16.vlgmr.msra.gmra.mrb[0].mxu0 %vm469_vm0, %v4242_v61  ;;  %5559 = vmatprep.mubr.msk.bf16.mxu1 %vm469_vm0, %v1898_v62  ;;  %v4264_v61 = vsel %vm1388_vm3, %v4261_v51, %v4263_v53  ;;  %v6243_v62 = vld [vmem:[%s6342_s8 + $0x9c] sm:$0xff]   ;;  %v4265_v0 = vrot.slane %v6241_v58, 2 }
  0xf9   : > { %5743 = vmatprep.mubr.msk.bf16.mxu0 %vm469_vm0, %v4244_v1  ;;  %v2393_v1 = vrot.slane %v6242_v60, 3  ;;  %v4267_v2 = vrot.slane %v6243_v62, 2 }
  0xfa   : > { %v4266_v5 = vsel %vm1388_vm3, %v4263_v53, %v4265_v0 }
  0xfb   : > { %v2394_v6 = vsel %vm2363_vm1, %v2391_v63, %v2393_v1  ;;  %v4268_v8 = vsel %vm1388_vm3, %v4265_v0, %v4267_v2 }
  0xff   : > { %5560 = vmatmul.mubr.msk.bf16.gmra.mrb[20].mxu1 %vm469_vm0, %v1900_v7  ;;  %v6245_v7 = vld [vmem:[%s6342_s8 + $0xa4] ss:$0 sps:$4 sm:$0x33]  }
 0x100   : > { %5744 = vmatmul.mubr.msk.bf16.gmra.mrb[4].mxu0 %vm469_vm0, %v4246_v9  ;;  %5563 = vmatprep.mubr.msk.bf16.mxu1 %vm469_vm0, %v1902_v10  ;;  %v2395_v9 = vrot.slane %v6244_v4, 3  ;;  %v4269_v10 = vrot.slane %v6245_v7, 2 }
 0x101   : > { %5747 = vmatprep.mubr.msk.bf16.mxu0 %vm469_vm0, %v4248_v14 }
 0x102   : > { %v2396_v11 = vsel %vm2363_vm1, %v2393_v1, %v2395_v9  ;;  %v4270_v12 = vsel %vm1388_vm3, %v4267_v2, %v4269_v10 }
 0x107   : > { %5564 = vmatmul.mubr.msk.bf16.gmra.mrb[24].mxu1 %vm469_vm0, %v1904_v59 }
 0x108   : > { %5748 = vmatmul.mubr.msk.bf16.gmra.mrb[8].mxu0 %vm469_vm0, %v4250_v21  ;;  %5567 = vmatprep.mubr.msk.bf16.mxu1 %vm469_vm0, %v1906_v22 }
 0x109   : > { %5751 = vmatprep.mubr.msk.bf16.mxu0 %vm469_vm0, %v4252_v25 }
 0x10f   : > { %5568 = vmatmul.mubr.msk.bf16.gmra.mrb[28].mxu1 %vm469_vm0, %v1908_v31 }
 0x110   : > { %5752 = vmatmul.mubr.msk.bf16.gmra.mrb[12].mxu0 %vm469_vm0, %v4254_v32  ;;  %5595 = vmatprep.mubr.msk.bf16.mxu1 %vm469_vm0, %v2382_v33 }
 0x111   : > { %5755 = vmatprep.mubr.msk.bf16.mxu0 %vm469_vm0, %v4256_v36 }
 0x117   : > { %5596 = vmatmul.mubr.msk.bf16.vlgmr.msra.gmra.mrb[16].mxu1 %vm469_vm0, %v2384_v40 }
 0x118   : > { %5756 = vmatmul.mubr.msk.bf16.gmra.mrb[16].mxu0 %vm469_vm0, %v4258_v42  ;;  %5599 = vmatprep.mubr.msk.bf16.mxu1 %vm469_vm0, %v2386_v45 }
 0x119   : > { %5759 = vmatprep.mubr.msk.bf16.mxu0 %vm469_vm0, %v4260_v48 }
 0x11f   : > { %5600 = vmatmul.mubr.msk.bf16.gmra.mrb[20].mxu1 %vm469_vm0, %v2388_v54 }
 0x120   : > { %5760 = vmatmul.mubr.msk.bf16.gmra.mrb[20].mxu0 %vm469_vm0, %v4262_v56  ;;  %5603 = vmatprep.mubr.msk.bf16.mxu1 %vm469_vm0, %v2390_v57 }
 0x121   : > { %5763 = vmatprep.mubr.msk.bf16.mxu0 %vm469_vm0, %v4264_v61 }
 0x127   : > { %5604 = vmatmul.mubr.msk.bf16.gmra.mrb[24].mxu1 %vm469_vm0, %v2392_v3 }
 0x128   : > { %5764 = vmatmul.mubr.msk.bf16.gmra.mrb[24].mxu0 %vm469_vm0, %v4266_v5  ;;  %5607 = vmatprep.mubr.msk.bf16.mxu1 %vm469_vm0, %v2394_v6 }
 0x129   : > { %5767 = vmatprep.mubr.msk.bf16.mxu0 %vm469_vm0, %v4268_v8 }
 0x12f   : > { %5608 = vmatmul.mubr.msk.bf16.gmra.mrb[28].mxu1 %vm469_vm0, %v2396_v11 }
 0x130   : > { %5768 = vmatmul.mubr.msk.bf16.gmra.mrb[28].mxu0 %vm469_vm0, %v4270_v12 }
 0x1aa   : > { %v5541_v14 = vpop.f32.mrb[0].mxu1 }
 0x1ab   : > { %v2015_v15 = vpop.f32.mrb[1].mxu1 }
 0x1ac   : > { %v5542_v16 = vpop.f32.mrb[2].mxu1 }
 0x1ad   : > { %v2018_v17 = vpop.f32.mrb[3].mxu1 }
 0x1b2   : > { %v5545_v18 = vpop.f32.mrb[4].mxu1 }
 0x1b3   : > { %v2031_v19 = vpop.f32.mrb[5].mxu1 }
 0x1b4   : > { %v5546_v59 = vpop.f32.mrb[6].mxu1 }
 0x1b5   : > { %v2034_v20 = vpop.f32.mrb[7].mxu1 }
 0x1ba   : > { %v5549_v21 = vpop.f32.mrb[8].mxu1 }
 0x1bb   : > { %v2047_v22 = vpop.f32.mrb[9].mxu1 }
 0x1bc   : > { %v5550_v23 = vpop.f32.mrb[10].mxu1 }
 0x1bd   : > { %v2050_v24 = vpop.f32.mrb[11].mxu1 }
 0x1c2   : > { %v6853_v25 = vpop.f32.mrb[12].mxu1 }
 0x1c3   : > { %v6855_v26 = vpop.f32.mrb[13].mxu1 }
 0x1c4   : > { %v6857_v27 = vpop.f32.mrb[14].mxu1 }
 0x1c5   : > { %v6859_v28 = vpop.f32.mrb[15].mxu1 }
 0x1cb   : > { %v5741_v29 = vpop.f32.mrb[0].mxu0 }
 0x1cc   : > { %v5779_v31 = vadd.f32 %v5741_v29, %v5541_v14  ;;  %v4377_v13 = vpop.f32.mrb[1].mxu0 }
 0x1cd   : > { %v5780_v32 = vadd.f32 %v4377_v13, %v2015_v15  ;;  %v5742_v33 = vpop.f32.mrb[2].mxu0 }
 0x1ce   : > { %v4612_v34 = vadd.f32 %v5779_v31, %v6864_v30  ;;  %v5781_v35 = vadd.f32 %v5742_v33, %v5542_v16  ;;  %v4380_v36 = vpop.f32.mrb[3].mxu0 }
 0x1cf   : > { %v4610_v37 = vadd.f32 %v5780_v32, %v6864_v30  ;;  %v5782_v38 = vadd.f32 %v4380_v36, %v2018_v17 }
 0x1d0   : > { %v4644_v43 = vmax.f32 %v4612_v34, 0.0  ;;  %v4613_v39 = vadd.f32 %v5781_v35, %v6864_v30 }
 0x1d1   : > { %v4642_v46 = vmax.f32 %v4610_v37, 0.0  ;;  %v4611_v40 = vadd.f32 %v5782_v38, %v6864_v30 }
 0x1d2   : > { %4676 = vst [vmem:[%s6871_s11 + $0x10] sm:$0xff] %v4644_v43  ;;  %v4645_v41 = vmax.f32 %v4613_v39, 0.0 }
 0x1d3   : > { %4674 = vst [vmem:[%s6871_s11] sm:$0xff] %v4642_v46  ;;  %v4643_v42 = vmax.f32 %v4611_v40, 0.0  ;;  %v5745_v45 = vpop.f32.mrb[4].mxu0 }
 0x1d4   : > { %4677 = vst [vmem:[%s6871_s11 + $0x18] sm:$0xff] %v4645_v41  ;;  %v5783_v44 = vadd.f32 %v5745_v45, %v5545_v18  ;;  %v4393_v47 = vpop.f32.mrb[5].mxu0 }
 0x1d5   : > { %4675 = vst [vmem:[%s6871_s11 + $0x8] sm:$0xff] %v4643_v42  ;;  %v5784_v48 = vadd.f32 %v4393_v47, %v2031_v19  ;;  %v5746_v49 = vpop.f32.mrb[6].mxu0 }
 0x1d6   : > { %v4616_v50 = vadd.f32 %v5783_v44, %v6864_v30  ;;  %v5785_v51 = vadd.f32 %v5746_v49, %v5546_v59  ;;  %v4396_v52 = vpop.f32.mrb[7].mxu0 }
 0x1d7   : > { %v4614_v53 = vadd.f32 %v5784_v48, %v6864_v30  ;;  %v5786_v54 = vadd.f32 %v4396_v52, %v2034_v20 }
 0x1d8   : > { %v4648_v55 = vmax.f32 %v4616_v50, 0.0  ;;  %v4617_v56 = vadd.f32 %v5785_v51, %v6864_v30 }
 0x1d9   : > { %v4646_v57 = vmax.f32 %v4614_v53, 0.0  ;;  %v4615_v58 = vadd.f32 %v5786_v54, %v6864_v30 }
 0x1da   : > { %4680 = vst [vmem:[%s6871_s11 + $0x30] sm:$0xff] %v4648_v55  ;;  %v4649_v60 = vmax.f32 %v4617_v56, 0.0 }
 0x1db   : > { %4678 = vst [vmem:[%s6871_s11 + $0x20] sm:$0xff] %v4646_v57  ;;  %v4647_v61 = vmax.f32 %v4615_v58, 0.0  ;;  %v5749_v62 = vpop.f32.mrb[8].mxu0 }
 0x1dc   : > { %4681 = vst [vmem:[%s6871_s11 + $0x38] sm:$0xff] %v4649_v60  ;;  %v5787_v63 = vadd.f32 %v5749_v62, %v5549_v21  ;;  %v4409_v0 = vpop.f32.mrb[9].mxu0 }
 0x1dd   : > { %4679 = vst [vmem:[%s6871_s11 + $0x28] sm:$0xff] %v4647_v61  ;;  %v5788_v1 = vadd.f32 %v4409_v0, %v2047_v22  ;;  %v5750_v2 = vpop.f32.mrb[10].mxu0 }
 0x1de   : > { %v4620_v3 = vadd.f32 %v5787_v63, %v6864_v30  ;;  %v5789_v4 = vadd.f32 %v5750_v2, %v5550_v23  ;;  %v4412_v5 = vpop.f32.mrb[11].mxu0 }
 0x1df   : > { %v4618_v6 = vadd.f32 %v5788_v1, %v6864_v30  ;;  %v5790_v7 = vadd.f32 %v4412_v5, %v2050_v24 }
 0x1e0   : > { %v4652_v8 = vmax.f32 %v4620_v3, 0.0  ;;  %v4621_v9 = vadd.f32 %v5789_v4, %v6864_v30 }
 0x1e1   : > { %v4650_v10 = vmax.f32 %v4618_v6, 0.0  ;;  %v4619_v11 = vadd.f32 %v5790_v7, %v6864_v30 }
 0x1e2   : > { %4684 = vst [vmem:[%s6871_s11 + $0x50] sm:$0xff] %v4652_v8  ;;  %v4653_v12 = vmax.f32 %v4621_v9, 0.0 }
 0x1e3   : > { %4682 = vst [vmem:[%s6871_s11 + $0x40] sm:$0xff] %v4650_v10  ;;  %v4651_v14 = vmax.f32 %v4619_v11, 0.0  ;;  %v5753_v15 = vpop.f32.mrb[12].mxu0 }
 0x1e4   : > { %4685 = vst [vmem:[%s6871_s11 + $0x58] sm:$0xff] %v4653_v12  ;;  %v5791_v16 = vadd.f32 %v5753_v15, %v6853_v25  ;;  %v4425_v17 = vpop.f32.mrb[13].mxu0 }
 0x1e5   : > { %4683 = vst [vmem:[%s6871_s11 + $0x48] sm:$0xff] %v4651_v14  ;;  %v5792_v18 = vadd.f32 %v4425_v17, %v6855_v26  ;;  %v5754_v19 = vpop.f32.mrb[14].mxu0 }
 0x1e6   : > { %v4624_v59 = vadd.f32 %v5791_v16, %v6864_v30  ;;  %v5793_v20 = vadd.f32 %v5754_v19, %v6857_v27  ;;  %v4428_v21 = vpop.f32.mrb[15].mxu0 }
 0x1e7   : > { %v4622_v22 = vadd.f32 %v5792_v18, %v6864_v30  ;;  %v5794_v23 = vadd.f32 %v4428_v21, %v6859_v28 }
 0x1e8   : > { %v4656_v24 = vmax.f32 %v4624_v59, 0.0  ;;  %v4625_v25 = vadd.f32 %v5793_v20, %v6864_v30 }
 0x1e9   : > { %v4654_v29 = vmax.f32 %v4622_v22, 0.0  ;;  %v4623_v31 = vadd.f32 %v5794_v23, %v6864_v30 }
 0x1ea   : > { %4688 = vst [vmem:[%s6871_s11 + $0x70] sm:$0xff] %v4656_v24  ;;  %v4657_v26 = vmax.f32 %v4625_v25, 0.0  ;;  %v5597_v13 = vpop.f32.mrb[16].mxu1 }
 0x1eb   : > { %4686 = vst [vmem:[%s6871_s11 + $0x60] sm:$0xff] %v4654_v29  ;;  %v4655_v32 = vmax.f32 %v4623_v31, 0.0  ;;  %v5757_v33 = vpop.f32.mrb[16].mxu0  ;;  %v2567_v34 = vpop.f32.mrb[17].mxu1 }
 0x1ec   : > { %4689 = vst [vmem:[%s6871_s11 + $0x78] sm:$0xff] %v4657_v26  ;;  %v5795_v27 = vadd.f32 %v5757_v33, %v5597_v13  ;;  %v4441_v35 = vpop.f32.mrb[17].mxu0  ;;  %v5598_v36 = vpop.f32.mrb[18].mxu1 }
 0x1ed   : > { %4687 = vst [vmem:[%s6871_s11 + $0x68] sm:$0xff] %v4655_v32  ;;  %v5796_v28 = vadd.f32 %v4441_v35, %v2567_v34  ;;  %v5758_v37 = vpop.f32.mrb[18].mxu0  ;;  %v2570_v38 = vpop.f32.mrb[19].mxu1 }
 0x1ee   : > { %v4628_v43 = vadd.f32 %v5795_v27, %v6864_v30  ;;  %v5797_v39 = vadd.f32 %v5758_v37, %v5598_v36  ;;  %v4444_v46 = vpop.f32.mrb[19].mxu0 }
 0x1ef   : > { %v4626_v40 = vadd.f32 %v5796_v28, %v6864_v30  ;;  %v5798_v41 = vadd.f32 %v4444_v46, %v2570_v38 }
 0x1f0   : > { %v4660_v42 = vmax.f32 %v4628_v43, 0.0  ;;  %v4629_v45 = vadd.f32 %v5797_v39, %v6864_v30 }
 0x1f1   : > { %v4658_v44 = vmax.f32 %v4626_v40, 0.0  ;;  %v4627_v47 = vadd.f32 %v5798_v41, %v6864_v30 }
 0x1f2   : > { %4692 = vst [vmem:[%s6871_s11 + $0x90] sm:$0xff] %v4660_v42  ;;  %v4661_v48 = vmax.f32 %v4629_v45, 0.0  ;;  %v5601_v49 = vpop.f32.mrb[20].mxu1 }
 0x1f3   : > { %4690 = vst [vmem:[%s6871_s11 + $0x80] sm:$0xff] %v4658_v44  ;;  %v4659_v50 = vmax.f32 %v4627_v47, 0.0  ;;  %v5761_v51 = vpop.f32.mrb[20].mxu0  ;;  %v2583_v52 = vpop.f32.mrb[21].mxu1 }
 0x1f4   : > { %4693 = vst [vmem:[%s6871_s11 + $0x98] sm:$0xff] %v4661_v48  ;;  %v5799_v53 = vadd.f32 %v5761_v51, %v5601_v49  ;;  %v4457_v54 = vpop.f32.mrb[21].mxu0  ;;  %v5602_v55 = vpop.f32.mrb[22].mxu1 }
 0x1f5   : > { %4691 = vst [vmem:[%s6871_s11 + $0x88] sm:$0xff] %v4659_v50  ;;  %v5800_v56 = vadd.f32 %v4457_v54, %v2583_v52  ;;  %v5762_v57 = vpop.f32.mrb[22].mxu0  ;;  %v2586_v58 = vpop.f32.mrb[23].mxu1 }
 0x1f6   : > { %v4632_v60 = vadd.f32 %v5799_v53, %v6864_v30  ;;  %v5801_v61 = vadd.f32 %v5762_v57, %v5602_v55  ;;  %v4460_v62 = vpop.f32.mrb[23].mxu0 }
 0x1f7   : > { %v4630_v63 = vadd.f32 %v5800_v56, %v6864_v30  ;;  %v5802_v0 = vadd.f32 %v4460_v62, %v2586_v58 }
 0x1f8   : > { %v4664_v1 = vmax.f32 %v4632_v60, 0.0  ;;  %v4633_v2 = vadd.f32 %v5801_v61, %v6864_v30 }
 0x1f9   : > { %v4662_v3 = vmax.f32 %v4630_v63, 0.0  ;;  %v4631_v4 = vadd.f32 %v5802_v0, %v6864_v30 }
 0x1fa   : > { %4696 = vst [vmem:[%s6871_s11 + $0xb0] sm:$0xff] %v4664_v1  ;;  %v4665_v5 = vmax.f32 %v4633_v2, 0.0  ;;  %v5605_v6 = vpop.f32.mrb[24].mxu1 }
 0x1fb   : > { %4694 = vst [vmem:[%s6871_s11 + $0xa0] sm:$0xff] %v4662_v3  ;;  %v4663_v7 = vmax.f32 %v4631_v4, 0.0  ;;  %v5765_v8 = vpop.f32.mrb[24].mxu0  ;;  %v2599_v9 = vpop.f32.mrb[25].mxu1 }
 0x1fc   : > { %4697 = vst [vmem:[%s6871_s11 + $0xb8] sm:$0xff] %v4665_v5  ;;  %v5803_v10 = vadd.f32 %v5765_v8, %v5605_v6  ;;  %v4473_v11 = vpop.f32.mrb[25].mxu0  ;;  %v5606_v12 = vpop.f32.mrb[26].mxu1 }
 0x1fd   : > { %4695 = vst [vmem:[%s6871_s11 + $0xa8] sm:$0xff] %v4663_v7  ;;  %v5804_v14 = vadd.f32 %v4473_v11, %v2599_v9  ;;  %v5766_v15 = vpop.f32.mrb[26].mxu0  ;;  %v2602_v16 = vpop.f32.mrb[27].mxu1 }
 0x1fe   : > { %v4636_v17 = vadd.f32 %v5803_v10, %v6864_v30  ;;  %v5805_v18 = vadd.f32 %v5766_v15, %v5606_v12  ;;  %v4476_v19 = vpop.f32.mrb[27].mxu0 }
 0x1ff   : > { %v4634_v59 = vadd.f32 %v5804_v14, %v6864_v30  ;;  %v5806_v20 = vadd.f32 %v4476_v19, %v2602_v16 }
 0x200   : > { %v4668_v21 = vmax.f32 %v4636_v17, 0.0  ;;  %v4637_v22 = vadd.f32 %v5805_v18, %v6864_v30 }
 0x201   : > { %v4666_v23 = vmax.f32 %v4634_v59, 0.0  ;;  %v4635_v24 = vadd.f32 %v5806_v20, %v6864_v30 }
 0x202   : > { %4700 = vst [vmem:[%s6871_s11 + $0xd0] sm:$0xff] %v4668_v21  ;;  %v4669_v25 = vmax.f32 %v4637_v22, 0.0  ;;  %v5609_v29 = vpop.f32.mrb[28].mxu1 }
 0x203   : > { %4698 = vst [vmem:[%s6871_s11 + $0xc0] sm:$0xff] %v4666_v23  ;;  %v4667_v31 = vmax.f32 %v4635_v24, 0.0  ;;  %v5769_v26 = vpop.f32.mrb[28].mxu0  ;;  %v2615_v13 = vpop.f32.mrb[29].mxu1 }
 0x204   : > { %4701 = vst [vmem:[%s6871_s11 + $0xd8] sm:$0xff] %v4669_v25  ;;  %v5807_v32 = vadd.f32 %v5769_v26, %v5609_v29  ;;  %v4489_v33 = vpop.f32.mrb[29].mxu0  ;;  %v5610_v34 = vpop.f32.mrb[30].mxu1 }
 0x205   : > { %4699 = vst [vmem:[%s6871_s11 + $0xc8] sm:$0xff] %v4667_v31  ;;  %v5808_v27 = vadd.f32 %v4489_v33, %v2615_v13  ;;  %v5770_v35 = vpop.f32.mrb[30].mxu0  ;;  %v2618_v36 = vpop.f32.mrb[31].mxu1 }
 0x206   : > { %v4640_v28 = vadd.f32 %v5807_v32, %v6864_v30  ;;  %v5809_v37 = vadd.f32 %v5770_v35, %v5610_v34  ;;  %v4492_v38 = vpop.f32.mrb[31].mxu0 }
 0x207   : > { %v4638_v43 = vadd.f32 %v5808_v27, %v6864_v30  ;;  %v5810_v39 = vadd.f32 %v4492_v38, %v2618_v36 }
 0x208   : > { %v4672_v46 = vmax.f32 %v4640_v28, 0.0  ;;  %v4641_v40 = vadd.f32 %v5809_v37, %v6864_v30 }
 0x209   : > { %v4670_v41 = vmax.f32 %v4638_v43, 0.0  ;;  %v4639_v42 = vadd.f32 %v5810_v39, %v6864_v30 }
 0x20a   : > { %4704 = vst [vmem:[%s6871_s11 + $0xf0] sm:$0xff] %v4672_v46  ;;  %v4673_v45 = vmax.f32 %v4641_v40, 0.0 }
 0x20b   : > { %4702 = vst [vmem:[%s6871_s11 + $0xe0] sm:$0xff] %v4670_v41  ;;  %v4671_v44 = vmax.f32 %v4639_v42, 0.0 }
 0x20c   : > { %4705 = vst [vmem:[%s6871_s11 + $0xf8] sm:$0xff] %v4673_v45 }
 0x20d   : > { %4703 = vst [vmem:[%s6871_s11 + $0xe8] sm:$0xff] %v4671_v44 }
 0x20e PF: > { %s13_s14 = sadd.s32 1, %s6272_s14   ;;  %s6953_s12 = smov %s6268_s13 }
 0x20f   : > { %p10_p5 = scmp.ge.s32.totalorder %s13_s14, 4   ;;  %s6954_s13 = smov %s6956_s15 }
 0x211   :  { %12 = sbr.rel (!%p10_p5) target bundleno = 2 (0x2), region = 84 }

</bundles_post_ra>
